<compile_context>
chip_gen: v6e
topology: v6e:2x2x1
jax: 0.10.0
libtpu: 0.0.40
codegen_flags: <defaults>
</compile_context>

<pallas_src>
import jax
import jax.numpy as jnp
from jax.experimental import pallas as pl
from jax.experimental.pallas import tpu as pltpu

# ---- small, module-consistent shapes ----
B = 8          # batch (>=8 so f32 vregs fill all sublanes)
T = 8          # sequence length
H = 32         # hidden_size == embedding_size == gru_hidden_size
L = 2          # num_hidden_layers (stacked GRU layers)
NUM_ITEMS = 51 # args.num_items + 1
INIT_RANGE = 0.02


def gru4rec_kernel(x_ref, pos_ref, neg_ref, wih_ref, whh_ref, wd_ref, bd_ref,
                   loss_ref):
    """Fused GRU stack + dense + BPR loss.

    x_ref                 : (T*B, H) bf16, time-major flattened item_seq_emb.
    pos_ref / neg_ref     : (T*B, H) f32, time-major flattened pos/neg embs.
    wih_ref / whh_ref     : (L, H, 3H) bf16, pre-transposed, gates [r|z|n]
                            concatenated along lanes (inp @ w == [gi_r|gi_z|gi_n]).
    wd_ref                : (H, H) bf16, already transposed (y = x @ wd + b).
    bd_ref                : (1, H) f32.
    loss_ref              : (1, 1) f32 SMEM scalar output.
    """
    f32 = jnp.float32
    bf16 = jnp.bfloat16
    H2 = 2 * H
    # TODO(synk): nn.Dropout in training mode is stochastic; eval-mode
    # (identity) semantics are reproduced here.

    # ---- layer-0 input-to-hidden projection hoisted out of the recurrence:
    # one lane-dense (T*B, H) @ (H, 3H) bf16 matmul, f32 accumulation.
    gi0 = jnp.dot(x_ref[...], wih_ref[0], preferred_element_type=f32)  # (T*B, 3H)

    # ---- stacked GRU (bias=False), wavefront over (layer, time) ----
    h = [jnp.zeros((B, H), f32) for _ in range(L)]
    prev = [None] * L            # layer l's output at its latest produced step
    outs = [None] * T            # last-layer outputs, kept in registers

    for s in range(T + L - 1):
        new_prev = list(prev)
        for l in range(L):
            t = s - l
            if not (0 <= t < T):
                continue
            if l == 0:
                gi = gi0[t * B:(t + 1) * B, :]                        # (B, 3H)
            else:
                inp = prev[l - 1]  # layer l-1 output at time t (prev wavefront)
                gi = jnp.dot(inp.astype(bf16), wih_ref[l],
                             preferred_element_type=f32)              # (B, 3H)
            gh = jnp.dot(h[l].astype(bf16), whh_ref[l],
                         preferred_element_type=f32)                  # (B, 3H)
            # one sigmoid over the fused r|z lanes, gate math in f32
            rz = jax.nn.sigmoid(gi[:, :H2] + gh[:, :H2])              # (B, 2H)
            r = rz[:, :H]
            z = rz[:, H:]
            n = jnp.tanh(gi[:, H2:] + r * gh[:, H2:])
            h_new = (1.0 - z) * n + z * h[l]
            h[l] = h_new
            new_prev[l] = h_new
            if l == L - 1:
                outs[t] = h_new
        prev = new_prev

    # ---- dense projection on the flat (T*B, H) slab: y = gru_out @ W.T + b ----
    seq_flat = jnp.concatenate(outs, axis=0)                          # (T*B, H) f32
    seq_out = jnp.dot(seq_flat.astype(bf16), wd_ref[...],
                      preferred_element_type=f32) + bd_ref[...]       # (T*B, H)

    # ---- BPR loss (only the pos-neg logit difference enters the sigmoid) ----
    logit_diff = jnp.sum((pos_ref[...] - neg_ref[...]) * seq_out,
                         axis=-1, keepdims=True)                      # (T*B, 1)
    gamma = 1e-10
    loss = -jnp.log(gamma + jax.nn.sigmoid(logit_diff))
    loss_ref[0, 0] = jnp.mean(loss)


def gru4rec_loss_pallas(item_emb_table, wih, whh, wd, bd,
                        input_seq, pos_seq, neg_seq):
    f32, bf16 = jnp.float32, jnp.bfloat16

    # --- glue: embedding gathers (padding_idx=0 row is zero in the table),
    # flattened time-major to (T*B, H) so the kernel never reshapes. ---
    def gather_flat(seq, dtype):
        emb = jnp.transpose(item_emb_table[seq], (1, 0, 2))  # (T, B, H)
        return emb.reshape(T * B, H).astype(dtype)

    x_flat = gather_flat(input_seq, bf16)   # feeds the MXU -> bf16
    pos_flat = gather_flat(pos_seq, f32)    # elementwise only -> keep f32
    neg_flat = gather_flat(neg_seq, f32)

    # --- GRU weights: PyTorch stores (3H, H) per layer, rows [W_r; W_z; W_n].
    # Transposing gives (H, 3H) with gates concatenated along lanes, so
    # inp @ w == [gi_r | gi_z | gi_n]. One dot per projection per step. ---
    wih_g = jnp.transpose(wih, (0, 2, 1)).astype(bf16)   # (L, H, 3H)
    whh_g = jnp.transpose(whh, (0, 2, 1)).astype(bf16)   # (L, H, 3H)
    wd_t = wd.T.astype(bf16)                             # nn.Linear: y = x @ W.T + b

    vmem = pl.BlockSpec(memory_space=pltpu.MemorySpace.VMEM)
    smem = pl.BlockSpec(memory_space=pltpu.MemorySpace.SMEM)
    out = pl.pallas_call(
        gru4rec_kernel,
        out_shape=jax.ShapeDtypeStruct((1, 1), jnp.float32),
        in_specs=[vmem] * 7,
        out_specs=smem,
    )(x_flat, pos_flat, neg_flat, wih_g, whh_g, wd_t, bd)
    return out[0, 0]


def gru4rec_loss_ref(item_emb_table, wih, whh, wd, bd,
                     input_seq, pos_seq, neg_seq):
    """Pure-JAX f32 reference replicating the PyTorch forward (eval dropout)."""
    x = item_emb_table[input_seq]       # (B, T, H)
    pos_emb = item_emb_table[pos_seq]
    neg_emb = item_emb_table[neg_seq]
    for l in range(L):
        h = jnp.zeros((x.shape[0], H), jnp.float32)
        outs = []
        for t in range(T):
            gi = x[:, t, :] @ wih[l].T
            gh = h @ whh[l].T
            r = jax.nn.sigmoid(gi[:, :H] + gh[:, :H])
            z = jax.nn.sigmoid(gi[:, H:2 * H] + gh[:, H:2 * H])
            n = jnp.tanh(gi[:, 2 * H:] + r * gh[:, 2 * H:])
            h = (1.0 - z) * n + z * h
            outs.append(h[:, None, :])
        x = jnp.concatenate(outs, axis=1)
    seq_out = x @ wd.T + bd[0]
    pos_logits = jnp.sum(pos_emb * seq_out, -1)
    neg_logits = jnp.sum(neg_emb * seq_out, -1)
    return -jnp.mean(jnp.log(1e-10 + jax.nn.sigmoid(pos_logits - neg_logits)))


def init_params(key):
    k_emb, k_ih, k_hh, k_dense = jax.random.split(key, 4)
    # nn.Embedding: normal(0, initializer_range), padding_idx=0 row zeroed.
    emb = INIT_RANGE * jax.random.normal(k_emb, (NUM_ITEMS, H), jnp.float32)
    emb = emb.at[0].set(0.0)
    # GRU weights: xavier_uniform_-style (deterministic synthetic init).
    limit = (6.0 / (3 * H + H)) ** 0.5
    wih = jax.random.uniform(k_ih, (L, 3 * H, H), jnp.float32, -limit, limit)
    whh = jax.random.uniform(k_hh, (L, 3 * H, H), jnp.float32, -limit, limit)
    # nn.Linear: normal(0, initializer_range) weight, zero bias.
    wd = INIT_RANGE * jax.random.normal(k_dense, (H, H), jnp.float32)
    bd = jnp.zeros((1, H), jnp.float32)
    return emb, wih, whh, wd, bd


if __name__ == "__main__":
    key = jax.random.PRNGKey(0)
    k_params, k_in, k_pos, k_neg = jax.random.split(key, 4)
    emb, wih, whh, wd, bd = init_params(k_params)

    input_seq = jax.random.randint(k_in, (B, T), 1, NUM_ITEMS, jnp.int32)
    pos_seq = jax.random.randint(k_pos, (B, T), 1, NUM_ITEMS, jnp.int32)
    neg_seq = jax.random.randint(k_neg, (B, T), 1, NUM_ITEMS, jnp.int32)

    loss = gru4rec_loss_pallas(emb, wih, whh, wd, bd,
                               input_seq, pos_seq, neg_seq)
    loss = jax.block_until_ready(loss)

    ref = gru4rec_loss_ref(emb, wih, whh, wd, bd,
                           input_seq, pos_seq, neg_seq)
    # bf16 MXU operands -> loosened tolerance (test artifact, not a kernel bug).
    assert jnp.allclose(loss, ref, atol=1e-2, rtol=1e-2), (loss, ref)

    print("KERNEL_OK")
</pallas_src>

<mosaic_0001>
module attributes {stable_mosaic.version = 11 : i64} {
  func.func @gru4rec_kernel(%arg0: memref<64x32xbf16, #tpu.memory_space<vmem>>, %arg1: memref<64x32xf32, #tpu.memory_space<vmem>>, %arg2: memref<64x32xf32, #tpu.memory_space<vmem>>, %arg3: memref<2x32x96xbf16, #tpu.memory_space<vmem>>, %arg4: memref<2x32x96xbf16, #tpu.memory_space<vmem>>, %arg5: memref<32x32xbf16, #tpu.memory_space<vmem>>, %arg6: memref<1x32xf32, #tpu.memory_space<vmem>>, %arg7: memref<1x1xf32, #tpu.memory_space<smem>>) attributes {dimension_semantics = [], scalar_prefetch = 0 : i64, scratch_operands = 0 : i64, tpu.core_type = #tpu.core_type<tc>} {
    %c0 = arith.constant 0 : index
    %c0_0 = arith.constant 0 : index
    %0 = vector.load %arg0[%c0, %c0_0] : memref<64x32xbf16, #tpu.memory_space<vmem>>, vector<64x32xbf16>
    %c0_1 = arith.constant 0 : index
    %c0_2 = arith.constant 0 : index
    %c0_3 = arith.constant 0 : index
    %1 = vector.load %arg3[%c0_1, %c0_2, %c0_3] : memref<2x32x96xbf16, #tpu.memory_space<vmem>>, vector<1x32x96xbf16>
    %2 = vector.shape_cast %1 : vector<1x32x96xbf16> to vector<32x96xbf16>
    %cst = arith.constant dense<0.000000e+00> : vector<64x96xf32>
    %3 = tpu.matmul %0, %2, %cst {dimension_numbers = #tpu.dot_dimension_numbers<[1], [0], [0], [1], [0, 0, 1, 1], [], []>} : vector<64x32xbf16>, vector<32x96xbf16>, vector<64x96xf32> -> vector<64x96xf32>
    %cst_4 = arith.constant 0.000000e+00 : f32
    %4 = vector.broadcast %cst_4 : f32 to vector<8x32xf32>
    %cst_5 = arith.constant 0.000000e+00 : f32
    %5 = vector.broadcast %cst_5 : f32 to vector<8x32xf32>
    %6 = vector.extract_strided_slice %3 {offsets = [0, 0], sizes = [8, 96], strides = [1, 1]} : vector<64x96xf32> to vector<8x96xf32>
    %7 = arith.truncf %4 : vector<8x32xf32> to vector<8x32xbf16>
    %c0_6 = arith.constant 0 : index
    %c0_7 = arith.constant 0 : index
    %c0_8 = arith.constant 0 : index
    %8 = vector.load %arg4[%c0_6, %c0_7, %c0_8] : memref<2x32x96xbf16, #tpu.memory_space<vmem>>, vector<1x32x96xbf16>
    %9 = vector.shape_cast %8 : vector<1x32x96xbf16> to vector<32x96xbf16>
    %cst_9 = arith.constant dense<0.000000e+00> : vector<8x96xf32>
    %10 = tpu.matmul %7, %9, %cst_9 {dimension_numbers = #tpu.dot_dimension_numbers<[1], [0], [0], [1], [0, 0, 1, 1], [], []>} : vector<8x32xbf16>, vector<32x96xbf16>, vector<8x96xf32> -> vector<8x96xf32>
    %11 = vector.extract_strided_slice %6 {offsets = [0, 0], sizes = [8, 64], strides = [1, 1]} : vector<8x96xf32> to vector<8x64xf32>
    %12 = vector.extract_strided_slice %10 {offsets = [0, 0], sizes = [8, 64], strides = [1, 1]} : vector<8x96xf32> to vector<8x64xf32>
    %13 = arith.addf %11, %12 : vector<8x64xf32>
    %14 = arith.negf %13 : vector<8x64xf32>
    %15 = math.exp %14 : vector<8x64xf32>
    %cst_10 = arith.constant 1.000000e+00 : f32
    %16 = vector.broadcast %cst_10 : f32 to vector<8x64xf32>
    %17 = arith.addf %16, %15 : vector<8x64xf32>
    %18 = arith.divf %16, %17 : vector<8x64xf32>
    %19 = vector.extract_strided_slice %18 {offsets = [0, 0], sizes = [8, 32], strides = [1, 1]} : vector<8x64xf32> to vector<8x32xf32>
    %20 = vector.extract_strided_slice %18 {offsets = [0, 32], sizes = [8, 32], strides = [1, 1]} : vector<8x64xf32> to vector<8x32xf32>
    %21 = vector.extract_strided_slice %6 {offsets = [0, 64], sizes = [8, 32], strides = [1, 1]} : vector<8x96xf32> to vector<8x32xf32>
    %22 = vector.extract_strided_slice %10 {offsets = [0, 64], sizes = [8, 32], strides = [1, 1]} : vector<8x96xf32> to vector<8x32xf32>
    %23 = arith.mulf %19, %22 : vector<8x32xf32>
    %24 = arith.addf %21, %23 : vector<8x32xf32>
    %25 = math.tanh %24 : vector<8x32xf32>
    %cst_11 = arith.constant 1.000000e+00 : f32
    %26 = vector.broadcast %cst_11 : f32 to vector<8x32xf32>
    %27 = arith.subf %26, %20 : vector<8x32xf32>
    %28 = arith.mulf %27, %25 : vector<8x32xf32>
    %29 = arith.mulf %20, %4 : vector<8x32xf32>
    %30 = arith.addf %28, %29 : vector<8x32xf32>
    %31 = vector.extract_strided_slice %3 {offsets = [8, 0], sizes = [8, 96], strides = [1, 1]} : vector<64x96xf32> to vector<8x96xf32>
    %32 = arith.truncf %30 : vector<8x32xf32> to vector<8x32xbf16>
    %c0_12 = arith.constant 0 : index
    %c0_13 = arith.constant 0 : index
    %c0_14 = arith.constant 0 : index
    %33 = vector.load %arg4[%c0_12, %c0_13, %c0_14] : memref<2x32x96xbf16, #tpu.memory_space<vmem>>, vector<1x32x96xbf16>
    %34 = vector.shape_cast %33 : vector<1x32x96xbf16> to vector<32x96xbf16>
    %cst_15 = arith.constant dense<0.000000e+00> : vector<8x96xf32>
    %35 = tpu.matmul %32, %34, %cst_15 {dimension_numbers = #tpu.dot_dimension_numbers<[1], [0], [0], [1], [0, 0, 1, 1], [], []>} : vector<8x32xbf16>, vector<32x96xbf16>, vector<8x96xf32> -> vector<8x96xf32>
    %36 = vector.extract_strided_slice %31 {offsets = [0, 0], sizes = [8, 64], strides = [1, 1]} : vector<8x96xf32> to vector<8x64xf32>
    %37 = vector.extract_strided_slice %35 {offsets = [0, 0], sizes = [8, 64], strides = [1, 1]} : vector<8x96xf32> to vector<8x64xf32>
    %38 = arith.addf %36, %37 : vector<8x64xf32>
    %39 = arith.negf %38 : vector<8x64xf32>
    %40 = math.exp %39 : vector<8x64xf32>
    %cst_16 = arith.constant 1.000000e+00 : f32
    %41 = vector.broadcast %cst_16 : f32 to vector<8x64xf32>
    %42 = arith.addf %41, %40 : vector<8x64xf32>
    %43 = arith.divf %41, %42 : vector<8x64xf32>
    %44 = vector.extract_strided_slice %43 {offsets = [0, 0], sizes = [8, 32], strides = [1, 1]} : vector<8x64xf32> to vector<8x32xf32>
    %45 = vector.extract_strided_slice %43 {offsets = [0, 32], sizes = [8, 32], strides = [1, 1]} : vector<8x64xf32> to vector<8x32xf32>
    %46 = vector.extract_strided_slice %31 {offsets = [0, 64], sizes = [8, 32], strides = [1, 1]} : vector<8x96xf32> to vector<8x32xf32>
    %47 = vector.extract_strided_slice %35 {offsets = [0, 64], sizes = [8, 32], strides = [1, 1]} : vector<8x96xf32> to vector<8x32xf32>
    %48 = arith.mulf %44, %47 : vector<8x32xf32>
    %49 = arith.addf %46, %48 : vector<8x32xf32>
    %50 = math.tanh %49 : vector<8x32xf32>
    %cst_17 = arith.constant 1.000000e+00 : f32
    %51 = vector.broadcast %cst_17 : f32 to vector<8x32xf32>
    %52 = arith.subf %51, %45 : vector<8x32xf32>
    %53 = arith.mulf %52, %50 : vector<8x32xf32>
    %54 = arith.mulf %45, %30 : vector<8x32xf32>
    %55 = arith.addf %53, %54 : vector<8x32xf32>
    %56 = arith.truncf %30 : vector<8x32xf32> to vector<8x32xbf16>
    %c1 = arith.constant 1 : index
    %c0_18 = arith.constant 0 : index
    %c0_19 = arith.constant 0 : index
    %57 = vector.load %arg3[%c1, %c0_18, %c0_19] : memref<2x32x96xbf16, #tpu.memory_space<vmem>>, vector<1x32x96xbf16>
    %58 = vector.shape_cast %57 : vector<1x32x96xbf16> to vector<32x96xbf16>
    %cst_20 = arith.constant dense<0.000000e+00> : vector<8x96xf32>
    %59 = tpu.matmul %56, %58, %cst_20 {dimension_numbers = #tpu.dot_dimension_numbers<[1], [0], [0], [1], [0, 0, 1, 1], [], []>} : vector<8x32xbf16>, vector<32x96xbf16>, vector<8x96xf32> -> vector<8x96xf32>
    %60 = arith.truncf %5 : vector<8x32xf32> to vector<8x32xbf16>
    %c1_21 = arith.constant 1 : index
    %c0_22 = arith.constant 0 : index
    %c0_23 = arith.constant 0 : index
    %61 = vector.load %arg4[%c1_21, %c0_22, %c0_23] : memref<2x32x96xbf16, #tpu.memory_space<vmem>>, vector<1x32x96xbf16>
    %62 = vector.shape_cast %61 : vector<1x32x96xbf16> to vector<32x96xbf16>
    %cst_24 = arith.constant dense<0.000000e+00> : vector<8x96xf32>
    %63 = tpu.matmul %60, %62, %cst_24 {dimension_numbers = #tpu.dot_dimension_numbers<[1], [0], [0], [1], [0, 0, 1, 1], [], []>} : vector<8x32xbf16>, vector<32x96xbf16>, vector<8x96xf32> -> vector<8x96xf32>
    %64 = vector.extract_strided_slice %59 {offsets = [0, 0], sizes = [8, 64], strides = [1, 1]} : vector<8x96xf32> to vector<8x64xf32>
    %65 = vector.extract_strided_slice %63 {offsets = [0, 0], sizes = [8, 64], strides = [1, 1]} : vector<8x96xf32> to vector<8x64xf32>
    %66 = arith.addf %64, %65 : vector<8x64xf32>
    %67 = arith.negf %66 : vector<8x64xf32>
    %68 = math.exp %67 : vector<8x64xf32>
    %cst_25 = arith.constant 1.000000e+00 : f32
    %69 = vector.broadcast %cst_25 : f32 to vector<8x64xf32>
    %70 = arith.addf %69, %68 : vector<8x64xf32>
    %71 = arith.divf %69, %70 : vector<8x64xf32>
    %72 = vector.extract_strided_slice %71 {offsets = [0, 0], sizes = [8, 32], strides = [1, 1]} : vector<8x64xf32> to vector<8x32xf32>
    %73 = vector.extract_strided_slice %71 {offsets = [0, 32], sizes = [8, 32], strides = [1, 1]} : vector<8x64xf32> to vector<8x32xf32>
    %74 = vector.extract_strided_slice %59 {offsets = [0, 64], sizes = [8, 32], strides = [1, 1]} : vector<8x96xf32> to vector<8x32xf32>
    %75 = vector.extract_strided_slice %63 {offsets = [0, 64], sizes = [8, 32], strides = [1, 1]} : vector<8x96xf32> to vector<8x32xf32>
    %76 = arith.mulf %72, %75 : vector<8x32xf32>
    %77 = arith.addf %74, %76 : vector<8x32xf32>
    %78 = math.tanh %77 : vector<8x32xf32>
    %cst_26 = arith.constant 1.000000e+00 : f32
    %79 = vector.broadcast %cst_26 : f32 to vector<8x32xf32>
    %80 = arith.subf %79, %73 : vector<8x32xf32>
    %81 = arith.mulf %80, %78 : vector<8x32xf32>
    %82 = arith.mulf %73, %5 : vector<8x32xf32>
    %83 = arith.addf %81, %82 : vector<8x32xf32>
    %84 = vector.extract_strided_slice %3 {offsets = [16, 0], sizes = [8, 96], strides = [1, 1]} : vector<64x96xf32> to vector<8x96xf32>
    %85 = arith.truncf %55 : vector<8x32xf32> to vector<8x32xbf16>
    %c0_27 = arith.constant 0 : index
    %c0_28 = arith.constant 0 : index
    %c0_29 = arith.constant 0 : index
    %86 = vector.load %arg4[%c0_27, %c0_28, %c0_29] : memref<2x32x96xbf16, #tpu.memory_space<vmem>>, vector<1x32x96xbf16>
    %87 = vector.shape_cast %86 : vector<1x32x96xbf16> to vector<32x96xbf16>
    %cst_30 = arith.constant dense<0.000000e+00> : vector<8x96xf32>
    %88 = tpu.matmul %85, %87, %cst_30 {dimension_numbers = #tpu.dot_dimension_numbers<[1], [0], [0], [1], [0, 0, 1, 1], [], []>} : vector<8x32xbf16>, vector<32x96xbf16>, vector<8x96xf32> -> vector<8x96xf32>
    %89 = vector.extract_strided_slice %84 {offsets = [0, 0], sizes = [8, 64], strides = [1, 1]} : vector<8x96xf32> to vector<8x64xf32>
    %90 = vector.extract_strided_slice %88 {offsets = [0, 0], sizes = [8, 64], strides = [1, 1]} : vector<8x96xf32> to vector<8x64xf32>
    %91 = arith.addf %89, %90 : vector<8x64xf32>
    %92 = arith.negf %91 : vector<8x64xf32>
    %93 = math.exp %92 : vector<8x64xf32>
    %cst_31 = arith.constant 1.000000e+00 : f32
    %94 = vector.broadcast %cst_31 : f32 to vector<8x64xf32>
    %95 = arith.addf %94, %93 : vector<8x64xf32>
    %96 = arith.divf %94, %95 : vector<8x64xf32>
    %97 = vector.extract_strided_slice %96 {offsets = [0, 0], sizes = [8, 32], strides = [1, 1]} : vector<8x64xf32> to vector<8x32xf32>
    %98 = vector.extract_strided_slice %96 {offsets = [0, 32], sizes = [8, 32], strides = [1, 1]} : vector<8x64xf32> to vector<8x32xf32>
    %99 = vector.extract_strided_slice %84 {offsets = [0, 64], sizes = [8, 32], strides = [1, 1]} : vector<8x96xf32> to vector<8x32xf32>
    %100 = vector.extract_strided_slice %88 {offsets = [0, 64], sizes = [8, 32], strides = [1, 1]} : vector<8x96xf32> to vector<8x32xf32>
    %101 = arith.mulf %97, %100 : vector<8x32xf32>
    %102 = arith.addf %99, %101 : vector<8x32xf32>
    %103 = math.tanh %102 : vector<8x32xf32>
    %cst_32 = arith.constant 1.000000e+00 : f32
    %104 = vector.broadcast %cst_32 : f32 to vector<8x32xf32>
    %105 = arith.subf %104, %98 : vector<8x32xf32>
    %106 = arith.mulf %105, %103 : vector<8x32xf32>
    %107 = arith.mulf %98, %55 : vector<8x32xf32>
    %108 = arith.addf %106, %107 : vector<8x32xf32>
    %109 = arith.truncf %55 : vector<8x32xf32> to vector<8x32xbf16>
    %c1_33 = arith.constant 1 : index
    %c0_34 = arith.constant 0 : index
    %c0_35 = arith.constant 0 : index
    %110 = vector.load %arg3[%c1_33, %c0_34, %c0_35] : memref<2x32x96xbf16, #tpu.memory_space<vmem>>, vector<1x32x96xbf16>
    %111 = vector.shape_cast %110 : vector<1x32x96xbf16> to vector<32x96xbf16>
    %cst_36 = arith.constant dense<0.000000e+00> : vector<8x96xf32>
    %112 = tpu.matmul %109, %111, %cst_36 {dimension_numbers = #tpu.dot_dimension_numbers<[1], [0], [0], [1], [0, 0, 1, 1], [], []>} : vector<8x32xbf16>, vector<32x96xbf16>, vector<8x96xf32> -> vector<8x96xf32>
    %113 = arith.truncf %83 : vector<8x32xf32> to vector<8x32xbf16>
    %c1_37 = arith.constant 1 : index
    %c0_38 = arith.constant 0 : index
    %c0_39 = arith.constant 0 : index
    %114 = vector.load %arg4[%c1_37, %c0_38, %c0_39] : memref<2x32x96xbf16, #tpu.memory_space<vmem>>, vector<1x32x96xbf16>
    %115 = vector.shape_cast %114 : vector<1x32x96xbf16> to vector<32x96xbf16>
    %cst_40 = arith.constant dense<0.000000e+00> : vector<8x96xf32>
    %116 = tpu.matmul %113, %115, %cst_40 {dimension_numbers = #tpu.dot_dimension_numbers<[1], [0], [0], [1], [0, 0, 1, 1], [], []>} : vector<8x32xbf16>, vector<32x96xbf16>, vector<8x96xf32> -> vector<8x96xf32>
    %117 = vector.extract_strided_slice %112 {offsets = [0, 0], sizes = [8, 64], strides = [1, 1]} : vector<8x96xf32> to vector<8x64xf32>
    %118 = vector.extract_strided_slice %116 {offsets = [0, 0], sizes = [8, 64], strides = [1, 1]} : vector<8x96xf32> to vector<8x64xf32>
    %119 = arith.addf %117, %118 : vector<8x64xf32>
    %120 = arith.negf %119 : vector<8x64xf32>
    %121 = math.exp %120 : vector<8x64xf32>
    %cst_41 = arith.constant 1.000000e+00 : f32
    %122 = vector.broadcast %cst_41 : f32 to vector<8x64xf32>
    %123 = arith.addf %122, %121 : vector<8x64xf32>
    %124 = arith.divf %122, %123 : vector<8x64xf32>
    %125 = vector.extract_strided_slice %124 {offsets = [0, 0], sizes = [8, 32], strides = [1, 1]} : vector<8x64xf32> to vector<8x32xf32>
    %126 = vector.extract_strided_slice %124 {offsets = [0, 32], sizes = [8, 32], strides = [1, 1]} : vector<8x64xf32> to vector<8x32xf32>
    %127 = vector.extract_strided_slice %112 {offsets = [0, 64], sizes = [8, 32], strides = [1, 1]} : vector<8x96xf32> to vector<8x32xf32>
    %128 = vector.extract_strided_slice %116 {offsets = [0, 64], sizes = [8, 32], strides = [1, 1]} : vector<8x96xf32> to vector<8x32xf32>
    %129 = arith.mulf %125, %128 : vector<8x32xf32>
    %130 = arith.addf %127, %129 : vector<8x32xf32>
    %131 = math.tanh %130 : vector<8x32xf32>
    %cst_42 = arith.constant 1.000000e+00 : f32
    %132 = vector.broadcast %cst_42 : f32 to vector<8x32xf32>
    %133 = arith.subf %132, %126 : vector<8x32xf32>
    %134 = arith.mulf %133, %131 : vector<8x32xf32>
    %135 = arith.mulf %126, %83 : vector<8x32xf32>
    %136 = arith.addf %134, %135 : vector<8x32xf32>
    %137 = vector.extract_strided_slice %3 {offsets = [24, 0], sizes = [8, 96], strides = [1, 1]} : vector<64x96xf32> to vector<8x96xf32>
    %138 = arith.truncf %108 : vector<8x32xf32> to vector<8x32xbf16>
    %c0_43 = arith.constant 0 : index
    %c0_44 = arith.constant 0 : index
    %c0_45 = arith.constant 0 : index
    %139 = vector.load %arg4[%c0_43, %c0_44, %c0_45] : memref<2x32x96xbf16, #tpu.memory_space<vmem>>, vector<1x32x96xbf16>
    %140 = vector.shape_cast %139 : vector<1x32x96xbf16> to vector<32x96xbf16>
    %cst_46 = arith.constant dense<0.000000e+00> : vector<8x96xf32>
    %141 = tpu.matmul %138, %140, %cst_46 {dimension_numbers = #tpu.dot_dimension_numbers<[1], [0], [0], [1], [0, 0, 1, 1], [], []>} : vector<8x32xbf16>, vector<32x96xbf16>, vector<8x96xf32> -> vector<8x96xf32>
    %142 = vector.extract_strided_slice %137 {offsets = [0, 0], sizes = [8, 64], strides = [1, 1]} : vector<8x96xf32> to vector<8x64xf32>
    %143 = vector.extract_strided_slice %141 {offsets = [0, 0], sizes = [8, 64], strides = [1, 1]} : vector<8x96xf32> to vector<8x64xf32>
    %144 = arith.addf %142, %143 : vector<8x64xf32>
    %145 = arith.negf %144 : vector<8x64xf32>
    %146 = math.exp %145 : vector<8x64xf32>
    %cst_47 = arith.constant 1.000000e+00 : f32
    %147 = vector.broadcast %cst_47 : f32 to vector<8x64xf32>
    %148 = arith.addf %147, %146 : vector<8x64xf32>
    %149 = arith.divf %147, %148 : vector<8x64xf32>
    %150 = vector.extract_strided_slice %149 {offsets = [0, 0], sizes = [8, 32], strides = [1, 1]} : vector<8x64xf32> to vector<8x32xf32>
    %151 = vector.extract_strided_slice %149 {offsets = [0, 32], sizes = [8, 32], strides = [1, 1]} : vector<8x64xf32> to vector<8x32xf32>
    %152 = vector.extract_strided_slice %137 {offsets = [0, 64], sizes = [8, 32], strides = [1, 1]} : vector<8x96xf32> to vector<8x32xf32>
    %153 = vector.extract_strided_slice %141 {offsets = [0, 64], sizes = [8, 32], strides = [1, 1]} : vector<8x96xf32> to vector<8x32xf32>
    %154 = arith.mulf %150, %153 : vector<8x32xf32>
    %155 = arith.addf %152, %154 : vector<8x32xf32>
    %156 = math.tanh %155 : vector<8x32xf32>
    %cst_48 = arith.constant 1.000000e+00 : f32
    %157 = vector.broadcast %cst_48 : f32 to vector<8x32xf32>
    %158 = arith.subf %157, %151 : vector<8x32xf32>
    %159 = arith.mulf %158, %156 : vector<8x32xf32>
    %160 = arith.mulf %151, %108 : vector<8x32xf32>
    %161 = arith.addf %159, %160 : vector<8x32xf32>
    %162 = arith.truncf %108 : vector<8x32xf32> to vector<8x32xbf16>
    %c1_49 = arith.constant 1 : index
    %c0_50 = arith.constant 0 : index
    %c0_51 = arith.constant 0 : index
    %163 = vector.load %arg3[%c1_49, %c0_50, %c0_51] : memref<2x32x96xbf16, #tpu.memory_space<vmem>>, vector<1x32x96xbf16>
    %164 = vector.shape_cast %163 : vector<1x32x96xbf16> to vector<32x96xbf16>
    %cst_52 = arith.constant dense<0.000000e+00> : vector<8x96xf32>
    %165 = tpu.matmul %162, %164, %cst_52 {dimension_numbers = #tpu.dot_dimension_numbers<[1], [0], [0], [1], [0, 0, 1, 1], [], []>} : vector<8x32xbf16>, vector<32x96xbf16>, vector<8x96xf32> -> vector<8x96xf32>
    %166 = arith.truncf %136 : vector<8x32xf32> to vector<8x32xbf16>
    %c1_53 = arith.constant 1 : index
    %c0_54 = arith.constant 0 : index
    %c0_55 = arith.constant 0 : index
    %167 = vector.load %arg4[%c1_53, %c0_54, %c0_55] : memref<2x32x96xbf16, #tpu.memory_space<vmem>>, vector<1x32x96xbf16>
    %168 = vector.shape_cast %167 : vector<1x32x96xbf16> to vector<32x96xbf16>
    %cst_56 = arith.constant dense<0.000000e+00> : vector<8x96xf32>
    %169 = tpu.matmul %166, %168, %cst_56 {dimension_numbers = #tpu.dot_dimension_numbers<[1], [0], [0], [1], [0, 0, 1, 1], [], []>} : vector<8x32xbf16>, vector<32x96xbf16>, vector<8x96xf32> -> vector<8x96xf32>
    %170 = vector.extract_strided_slice %165 {offsets = [0, 0], sizes = [8, 64], strides = [1, 1]} : vector<8x96xf32> to vector<8x64xf32>
    %171 = vector.extract_strided_slice %169 {offsets = [0, 0], sizes = [8, 64], strides = [1, 1]} : vector<8x96xf32> to vector<8x64xf32>
    %172 = arith.addf %170, %171 : vector<8x64xf32>
    %173 = arith.negf %172 : vector<8x64xf32>
    %174 = math.exp %173 : vector<8x64xf32>
    %cst_57 = arith.constant 1.000000e+00 : f32
    %175 = vector.broadcast %cst_57 : f32 to vector<8x64xf32>
    %176 = arith.addf %175, %174 : vector<8x64xf32>
    %177 = arith.divf %175, %176 : vector<8x64xf32>
    %178 = vector.extract_strided_slice %177 {offsets = [0, 0], sizes = [8, 32], strides = [1, 1]} : vector<8x64xf32> to vector<8x32xf32>
    %179 = vector.extract_strided_slice %177 {offsets = [0, 32], sizes = [8, 32], strides = [1, 1]} : vector<8x64xf32> to vector<8x32xf32>
    %180 = vector.extract_strided_slice %165 {offsets = [0, 64], sizes = [8, 32], strides = [1, 1]} : vector<8x96xf32> to vector<8x32xf32>
    %181 = vector.extract_strided_slice %169 {offsets = [0, 64], sizes = [8, 32], strides = [1, 1]} : vector<8x96xf32> to vector<8x32xf32>
    %182 = arith.mulf %178, %181 : vector<8x32xf32>
    %183 = arith.addf %180, %182 : vector<8x32xf32>
    %184 = math.tanh %183 : vector<8x32xf32>
    %cst_58 = arith.constant 1.000000e+00 : f32
    %185 = vector.broadcast %cst_58 : f32 to vector<8x32xf32>
    %186 = arith.subf %185, %179 : vector<8x32xf32>
    %187 = arith.mulf %186, %184 : vector<8x32xf32>
    %188 = arith.mulf %179, %136 : vector<8x32xf32>
    %189 = arith.addf %187, %188 : vector<8x32xf32>
    %190 = vector.extract_strided_slice %3 {offsets = [32, 0], sizes = [8, 96], strides = [1, 1]} : vector<64x96xf32> to vector<8x96xf32>
    %191 = arith.truncf %161 : vector<8x32xf32> to vector<8x32xbf16>
    %c0_59 = arith.constant 0 : index
    %c0_60 = arith.constant 0 : index
    %c0_61 = arith.constant 0 : index
    %192 = vector.load %arg4[%c0_59, %c0_60, %c0_61] : memref<2x32x96xbf16, #tpu.memory_space<vmem>>, vector<1x32x96xbf16>
    %193 = vector.shape_cast %192 : vector<1x32x96xbf16> to vector<32x96xbf16>
    %cst_62 = arith.constant dense<0.000000e+00> : vector<8x96xf32>
    %194 = tpu.matmul %191, %193, %cst_62 {dimension_numbers = #tpu.dot_dimension_numbers<[1], [0], [0], [1], [0, 0, 1, 1], [], []>} : vector<8x32xbf16>, vector<32x96xbf16>, vector<8x96xf32> -> vector<8x96xf32>
    %195 = vector.extract_strided_slice %190 {offsets = [0, 0], sizes = [8, 64], strides = [1, 1]} : vector<8x96xf32> to vector<8x64xf32>
    %196 = vector.extract_strided_slice %194 {offsets = [0, 0], sizes = [8, 64], strides = [1, 1]} : vector<8x96xf32> to vector<8x64xf32>
    %197 = arith.addf %195, %196 : vector<8x64xf32>
    %198 = arith.negf %197 : vector<8x64xf32>
    %199 = math.exp %198 : vector<8x64xf32>
    %cst_63 = arith.constant 1.000000e+00 : f32
    %200 = vector.broadcast %cst_63 : f32 to vector<8x64xf32>
    %201 = arith.addf %200, %199 : vector<8x64xf32>
    %202 = arith.divf %200, %201 : vector<8x64xf32>
    %203 = vector.extract_strided_slice %202 {offsets = [0, 0], sizes = [8, 32], strides = [1, 1]} : vector<8x64xf32> to vector<8x32xf32>
    %204 = vector.extract_strided_slice %202 {offsets = [0, 32], sizes = [8, 32], strides = [1, 1]} : vector<8x64xf32> to vector<8x32xf32>
    %205 = vector.extract_strided_slice %190 {offsets = [0, 64], sizes = [8, 32], strides = [1, 1]} : vector<8x96xf32> to vector<8x32xf32>
    %206 = vector.extract_strided_slice %194 {offsets = [0, 64], sizes = [8, 32], strides = [1, 1]} : vector<8x96xf32> to vector<8x32xf32>
    %207 = arith.mulf %203, %206 : vector<8x32xf32>
    %208 = arith.addf %205, %207 : vector<8x32xf32>
    %209 = math.tanh %208 : vector<8x32xf32>
    %cst_64 = arith.constant 1.000000e+00 : f32
    %210 = vector.broadcast %cst_64 : f32 to vector<8x32xf32>
    %211 = arith.subf %210, %204 : vector<8x32xf32>
    %212 = arith.mulf %211, %209 : vector<8x32xf32>
    %213 = arith.mulf %204, %161 : vector<8x32xf32>
    %214 = arith.addf %212, %213 : vector<8x32xf32>
    %215 = arith.truncf %161 : vector<8x32xf32> to vector<8x32xbf16>
    %c1_65 = arith.constant 1 : index
    %c0_66 = arith.constant 0 : index
    %c0_67 = arith.constant 0 : index
    %216 = vector.load %arg3[%c1_65, %c0_66, %c0_67] : memref<2x32x96xbf16, #tpu.memory_space<vmem>>, vector<1x32x96xbf16>
    %217 = vector.shape_cast %216 : vector<1x32x96xbf16> to vector<32x96xbf16>
    %cst_68 = arith.constant dense<0.000000e+00> : vector<8x96xf32>
    %218 = tpu.matmul %215, %217, %cst_68 {dimension_numbers = #tpu.dot_dimension_numbers<[1], [0], [0], [1], [0, 0, 1, 1], [], []>} : vector<8x32xbf16>, vector<32x96xbf16>, vector<8x96xf32> -> vector<8x96xf32>
    %219 = arith.truncf %189 : vector<8x32xf32> to vector<8x32xbf16>
    %c1_69 = arith.constant 1 : index
    %c0_70 = arith.constant 0 : index
    %c0_71 = arith.constant 0 : index
    %220 = vector.load %arg4[%c1_69, %c0_70, %c0_71] : memref<2x32x96xbf16, #tpu.memory_space<vmem>>, vector<1x32x96xbf16>
    %221 = vector.shape_cast %220 : vector<1x32x96xbf16> to vector<32x96xbf16>
    %cst_72 = arith.constant dense<0.000000e+00> : vector<8x96xf32>
    %222 = tpu.matmul %219, %221, %cst_72 {dimension_numbers = #tpu.dot_dimension_numbers<[1], [0], [0], [1], [0, 0, 1, 1], [], []>} : vector<8x32xbf16>, vector<32x96xbf16>, vector<8x96xf32> -> vector<8x96xf32>
    %223 = vector.extract_strided_slice %218 {offsets = [0, 0], sizes = [8, 64], strides = [1, 1]} : vector<8x96xf32> to vector<8x64xf32>
    %224 = vector.extract_strided_slice %222 {offsets = [0, 0], sizes = [8, 64], strides = [1, 1]} : vector<8x96xf32> to vector<8x64xf32>
    %225 = arith.addf %223, %224 : vector<8x64xf32>
    %226 = arith.negf %225 : vector<8x64xf32>
    %227 = math.exp %226 : vector<8x64xf32>
    %cst_73 = arith.constant 1.000000e+00 : f32
    %228 = vector.broadcast %cst_73 : f32 to vector<8x64xf32>
    %229 = arith.addf %228, %227 : vector<8x64xf32>
    %230 = arith.divf %228, %229 : vector<8x64xf32>
    %231 = vector.extract_strided_slice %230 {offsets = [0, 0], sizes = [8, 32], strides = [1, 1]} : vector<8x64xf32> to vector<8x32xf32>
    %232 = vector.extract_strided_slice %230 {offsets = [0, 32], sizes = [8, 32], strides = [1, 1]} : vector<8x64xf32> to vector<8x32xf32>
    %233 = vector.extract_strided_slice %218 {offsets = [0, 64], sizes = [8, 32], strides = [1, 1]} : vector<8x96xf32> to vector<8x32xf32>
    %234 = vector.extract_strided_slice %222 {offsets = [0, 64], sizes = [8, 32], strides = [1, 1]} : vector<8x96xf32> to vector<8x32xf32>
    %235 = arith.mulf %231, %234 : vector<8x32xf32>
    %236 = arith.addf %233, %235 : vector<8x32xf32>
    %237 = math.tanh %236 : vector<8x32xf32>
    %cst_74 = arith.constant 1.000000e+00 : f32
    %238 = vector.broadcast %cst_74 : f32 to vector<8x32xf32>
    %239 = arith.subf %238, %232 : vector<8x32xf32>
    %240 = arith.mulf %239, %237 : vector<8x32xf32>
    %241 = arith.mulf %232, %189 : vector<8x32xf32>
    %242 = arith.addf %240, %241 : vector<8x32xf32>
    %243 = vector.extract_strided_slice %3 {offsets = [40, 0], sizes = [8, 96], strides = [1, 1]} : vector<64x96xf32> to vector<8x96xf32>
    %244 = arith.truncf %214 : vector<8x32xf32> to vector<8x32xbf16>
    %c0_75 = arith.constant 0 : index
    %c0_76 = arith.constant 0 : index
    %c0_77 = arith.constant 0 : index
    %245 = vector.load %arg4[%c0_75, %c0_76, %c0_77] : memref<2x32x96xbf16, #tpu.memory_space<vmem>>, vector<1x32x96xbf16>
    %246 = vector.shape_cast %245 : vector<1x32x96xbf16> to vector<32x96xbf16>
    %cst_78 = arith.constant dense<0.000000e+00> : vector<8x96xf32>
    %247 = tpu.matmul %244, %246, %cst_78 {dimension_numbers = #tpu.dot_dimension_numbers<[1], [0], [0], [1], [0, 0, 1, 1], [], []>} : vector<8x32xbf16>, vector<32x96xbf16>, vector<8x96xf32> -> vector<8x96xf32>
    %248 = vector.extract_strided_slice %243 {offsets = [0, 0], sizes = [8, 64], strides = [1, 1]} : vector<8x96xf32> to vector<8x64xf32>
    %249 = vector.extract_strided_slice %247 {offsets = [0, 0], sizes = [8, 64], strides = [1, 1]} : vector<8x96xf32> to vector<8x64xf32>
    %250 = arith.addf %248, %249 : vector<8x64xf32>
    %251 = arith.negf %250 : vector<8x64xf32>
    %252 = math.exp %251 : vector<8x64xf32>
    %cst_79 = arith.constant 1.000000e+00 : f32
    %253 = vector.broadcast %cst_79 : f32 to vector<8x64xf32>
    %254 = arith.addf %253, %252 : vector<8x64xf32>
    %255 = arith.divf %253, %254 : vector<8x64xf32>
    %256 = vector.extract_strided_slice %255 {offsets = [0, 0], sizes = [8, 32], strides = [1, 1]} : vector<8x64xf32> to vector<8x32xf32>
    %257 = vector.extract_strided_slice %255 {offsets = [0, 32], sizes = [8, 32], strides = [1, 1]} : vector<8x64xf32> to vector<8x32xf32>
    %258 = vector.extract_strided_slice %243 {offsets = [0, 64], sizes = [8, 32], strides = [1, 1]} : vector<8x96xf32> to vector<8x32xf32>
    %259 = vector.extract_strided_slice %247 {offsets = [0, 64], sizes = [8, 32], strides = [1, 1]} : vector<8x96xf32> to vector<8x32xf32>
    %260 = arith.mulf %256, %259 : vector<8x32xf32>
    %261 = arith.addf %258, %260 : vector<8x32xf32>
    %262 = math.tanh %261 : vector<8x32xf32>
    %cst_80 = arith.constant 1.000000e+00 : f32
    %263 = vector.broadcast %cst_80 : f32 to vector<8x32xf32>
    %264 = arith.subf %263, %257 : vector<8x32xf32>
    %265 = arith.mulf %264, %262 : vector<8x32xf32>
    %266 = arith.mulf %257, %214 : vector<8x32xf32>
    %267 = arith.addf %265, %266 : vector<8x32xf32>
    %268 = arith.truncf %214 : vector<8x32xf32> to vector<8x32xbf16>
    %c1_81 = arith.constant 1 : index
    %c0_82 = arith.constant 0 : index
    %c0_83 = arith.constant 0 : index
    %269 = vector.load %arg3[%c1_81, %c0_82, %c0_83] : memref<2x32x96xbf16, #tpu.memory_space<vmem>>, vector<1x32x96xbf16>
    %270 = vector.shape_cast %269 : vector<1x32x96xbf16> to vector<32x96xbf16>
    %cst_84 = arith.constant dense<0.000000e+00> : vector<8x96xf32>
    %271 = tpu.matmul %268, %270, %cst_84 {dimension_numbers = #tpu.dot_dimension_numbers<[1], [0], [0], [1], [0, 0, 1, 1], [], []>} : vector<8x32xbf16>, vector<32x96xbf16>, vector<8x96xf32> -> vector<8x96xf32>
    %272 = arith.truncf %242 : vector<8x32xf32> to vector<8x32xbf16>
    %c1_85 = arith.constant 1 : index
    %c0_86 = arith.constant 0 : index
    %c0_87 = arith.constant 0 : index
    %273 = vector.load %arg4[%c1_85, %c0_86, %c0_87] : memref<2x32x96xbf16, #tpu.memory_space<vmem>>, vector<1x32x96xbf16>
    %274 = vector.shape_cast %273 : vector<1x32x96xbf16> to vector<32x96xbf16>
    %cst_88 = arith.constant dense<0.000000e+00> : vector<8x96xf32>
    %275 = tpu.matmul %272, %274, %cst_88 {dimension_numbers = #tpu.dot_dimension_numbers<[1], [0], [0], [1], [0, 0, 1, 1], [], []>} : vector<8x32xbf16>, vector<32x96xbf16>, vector<8x96xf32> -> vector<8x96xf32>
    %276 = vector.extract_strided_slice %271 {offsets = [0, 0], sizes = [8, 64], strides = [1, 1]} : vector<8x96xf32> to vector<8x64xf32>
    %277 = vector.extract_strided_slice %275 {offsets = [0, 0], sizes = [8, 64], strides = [1, 1]} : vector<8x96xf32> to vector<8x64xf32>
    %278 = arith.addf %276, %277 : vector<8x64xf32>
    %279 = arith.negf %278 : vector<8x64xf32>
    %280 = math.exp %279 : vector<8x64xf32>
    %cst_89 = arith.constant 1.000000e+00 : f32
    %281 = vector.broadcast %cst_89 : f32 to vector<8x64xf32>
    %282 = arith.addf %281, %280 : vector<8x64xf32>
    %283 = arith.divf %281, %282 : vector<8x64xf32>
    %284 = vector.extract_strided_slice %283 {offsets = [0, 0], sizes = [8, 32], strides = [1, 1]} : vector<8x64xf32> to vector<8x32xf32>
    %285 = vector.extract_strided_slice %283 {offsets = [0, 32], sizes = [8, 32], strides = [1, 1]} : vector<8x64xf32> to vector<8x32xf32>
    %286 = vector.extract_strided_slice %271 {offsets = [0, 64], sizes = [8, 32], strides = [1, 1]} : vector<8x96xf32> to vector<8x32xf32>
    %287 = vector.extract_strided_slice %275 {offsets = [0, 64], sizes = [8, 32], strides = [1, 1]} : vector<8x96xf32> to vector<8x32xf32>
    %288 = arith.mulf %284, %287 : vector<8x32xf32>
    %289 = arith.addf %286, %288 : vector<8x32xf32>
    %290 = math.tanh %289 : vector<8x32xf32>
    %cst_90 = arith.constant 1.000000e+00 : f32
    %291 = vector.broadcast %cst_90 : f32 to vector<8x32xf32>
    %292 = arith.subf %291, %285 : vector<8x32xf32>
    %293 = arith.mulf %292, %290 : vector<8x32xf32>
    %294 = arith.mulf %285, %242 : vector<8x32xf32>
    %295 = arith.addf %293, %294 : vector<8x32xf32>
    %296 = vector.extract_strided_slice %3 {offsets = [48, 0], sizes = [8, 96], strides = [1, 1]} : vector<64x96xf32> to vector<8x96xf32>
    %297 = arith.truncf %267 : vector<8x32xf32> to vector<8x32xbf16>
    %c0_91 = arith.constant 0 : index
    %c0_92 = arith.constant 0 : index
    %c0_93 = arith.constant 0 : index
    %298 = vector.load %arg4[%c0_91, %c0_92, %c0_93] : memref<2x32x96xbf16, #tpu.memory_space<vmem>>, vector<1x32x96xbf16>
    %299 = vector.shape_cast %298 : vector<1x32x96xbf16> to vector<32x96xbf16>
    %cst_94 = arith.constant dense<0.000000e+00> : vector<8x96xf32>
    %300 = tpu.matmul %297, %299, %cst_94 {dimension_numbers = #tpu.dot_dimension_numbers<[1], [0], [0], [1], [0, 0, 1, 1], [], []>} : vector<8x32xbf16>, vector<32x96xbf16>, vector<8x96xf32> -> vector<8x96xf32>
    %301 = vector.extract_strided_slice %296 {offsets = [0, 0], sizes = [8, 64], strides = [1, 1]} : vector<8x96xf32> to vector<8x64xf32>
    %302 = vector.extract_strided_slice %300 {offsets = [0, 0], sizes = [8, 64], strides = [1, 1]} : vector<8x96xf32> to vector<8x64xf32>
    %303 = arith.addf %301, %302 : vector<8x64xf32>
    %304 = arith.negf %303 : vector<8x64xf32>
    %305 = math.exp %304 : vector<8x64xf32>
    %cst_95 = arith.constant 1.000000e+00 : f32
    %306 = vector.broadcast %cst_95 : f32 to vector<8x64xf32>
    %307 = arith.addf %306, %305 : vector<8x64xf32>
    %308 = arith.divf %306, %307 : vector<8x64xf32>
    %309 = vector.extract_strided_slice %308 {offsets = [0, 0], sizes = [8, 32], strides = [1, 1]} : vector<8x64xf32> to vector<8x32xf32>
    %310 = vector.extract_strided_slice %308 {offsets = [0, 32], sizes = [8, 32], strides = [1, 1]} : vector<8x64xf32> to vector<8x32xf32>
    %311 = vector.extract_strided_slice %296 {offsets = [0, 64], sizes = [8, 32], strides = [1, 1]} : vector<8x96xf32> to vector<8x32xf32>
    %312 = vector.extract_strided_slice %300 {offsets = [0, 64], sizes = [8, 32], strides = [1, 1]} : vector<8x96xf32> to vector<8x32xf32>
    %313 = arith.mulf %309, %312 : vector<8x32xf32>
    %314 = arith.addf %311, %313 : vector<8x32xf32>
    %315 = math.tanh %314 : vector<8x32xf32>
    %cst_96 = arith.constant 1.000000e+00 : f32
    %316 = vector.broadcast %cst_96 : f32 to vector<8x32xf32>
    %317 = arith.subf %316, %310 : vector<8x32xf32>
    %318 = arith.mulf %317, %315 : vector<8x32xf32>
    %319 = arith.mulf %310, %267 : vector<8x32xf32>
    %320 = arith.addf %318, %319 : vector<8x32xf32>
    %321 = arith.truncf %267 : vector<8x32xf32> to vector<8x32xbf16>
    %c1_97 = arith.constant 1 : index
    %c0_98 = arith.constant 0 : index
    %c0_99 = arith.constant 0 : index
    %322 = vector.load %arg3[%c1_97, %c0_98, %c0_99] : memref<2x32x96xbf16, #tpu.memory_space<vmem>>, vector<1x32x96xbf16>
    %323 = vector.shape_cast %322 : vector<1x32x96xbf16> to vector<32x96xbf16>
    %cst_100 = arith.constant dense<0.000000e+00> : vector<8x96xf32>
    %324 = tpu.matmul %321, %323, %cst_100 {dimension_numbers = #tpu.dot_dimension_numbers<[1], [0], [0], [1], [0, 0, 1, 1], [], []>} : vector<8x32xbf16>, vector<32x96xbf16>, vector<8x96xf32> -> vector<8x96xf32>
    %325 = arith.truncf %295 : vector<8x32xf32> to vector<8x32xbf16>
    %c1_101 = arith.constant 1 : index
    %c0_102 = arith.constant 0 : index
    %c0_103 = arith.constant 0 : index
    %326 = vector.load %arg4[%c1_101, %c0_102, %c0_103] : memref<2x32x96xbf16, #tpu.memory_space<vmem>>, vector<1x32x96xbf16>
    %327 = vector.shape_cast %326 : vector<1x32x96xbf16> to vector<32x96xbf16>
    %cst_104 = arith.constant dense<0.000000e+00> : vector<8x96xf32>
    %328 = tpu.matmul %325, %327, %cst_104 {dimension_numbers = #tpu.dot_dimension_numbers<[1], [0], [0], [1], [0, 0, 1, 1], [], []>} : vector<8x32xbf16>, vector<32x96xbf16>, vector<8x96xf32> -> vector<8x96xf32>
    %329 = vector.extract_strided_slice %324 {offsets = [0, 0], sizes = [8, 64], strides = [1, 1]} : vector<8x96xf32> to vector<8x64xf32>
    %330 = vector.extract_strided_slice %328 {offsets = [0, 0], sizes = [8, 64], strides = [1, 1]} : vector<8x96xf32> to vector<8x64xf32>
    %331 = arith.addf %329, %330 : vector<8x64xf32>
    %332 = arith.negf %331 : vector<8x64xf32>
    %333 = math.exp %332 : vector<8x64xf32>
    %cst_105 = arith.constant 1.000000e+00 : f32
    %334 = vector.broadcast %cst_105 : f32 to vector<8x64xf32>
    %335 = arith.addf %334, %333 : vector<8x64xf32>
    %336 = arith.divf %334, %335 : vector<8x64xf32>
    %337 = vector.extract_strided_slice %336 {offsets = [0, 0], sizes = [8, 32], strides = [1, 1]} : vector<8x64xf32> to vector<8x32xf32>
    %338 = vector.extract_strided_slice %336 {offsets = [0, 32], sizes = [8, 32], strides = [1, 1]} : vector<8x64xf32> to vector<8x32xf32>
    %339 = vector.extract_strided_slice %324 {offsets = [0, 64], sizes = [8, 32], strides = [1, 1]} : vector<8x96xf32> to vector<8x32xf32>
    %340 = vector.extract_strided_slice %328 {offsets = [0, 64], sizes = [8, 32], strides = [1, 1]} : vector<8x96xf32> to vector<8x32xf32>
    %341 = arith.mulf %337, %340 : vector<8x32xf32>
    %342 = arith.addf %339, %341 : vector<8x32xf32>
    %343 = math.tanh %342 : vector<8x32xf32>
    %cst_106 = arith.constant 1.000000e+00 : f32
    %344 = vector.broadcast %cst_106 : f32 to vector<8x32xf32>
    %345 = arith.subf %344, %338 : vector<8x32xf32>
    %346 = arith.mulf %345, %343 : vector<8x32xf32>
    %347 = arith.mulf %338, %295 : vector<8x32xf32>
    %348 = arith.addf %346, %347 : vector<8x32xf32>
    %349 = vector.extract_strided_slice %3 {offsets = [56, 0], sizes = [8, 96], strides = [1, 1]} : vector<64x96xf32> to vector<8x96xf32>
    %350 = arith.truncf %320 : vector<8x32xf32> to vector<8x32xbf16>
    %c0_107 = arith.constant 0 : index
    %c0_108 = arith.constant 0 : index
    %c0_109 = arith.constant 0 : index
    %351 = vector.load %arg4[%c0_107, %c0_108, %c0_109] : memref<2x32x96xbf16, #tpu.memory_space<vmem>>, vector<1x32x96xbf16>
    %352 = vector.shape_cast %351 : vector<1x32x96xbf16> to vector<32x96xbf16>
    %cst_110 = arith.constant dense<0.000000e+00> : vector<8x96xf32>
    %353 = tpu.matmul %350, %352, %cst_110 {dimension_numbers = #tpu.dot_dimension_numbers<[1], [0], [0], [1], [0, 0, 1, 1], [], []>} : vector<8x32xbf16>, vector<32x96xbf16>, vector<8x96xf32> -> vector<8x96xf32>
    %354 = vector.extract_strided_slice %349 {offsets = [0, 0], sizes = [8, 64], strides = [1, 1]} : vector<8x96xf32> to vector<8x64xf32>
    %355 = vector.extract_strided_slice %353 {offsets = [0, 0], sizes = [8, 64], strides = [1, 1]} : vector<8x96xf32> to vector<8x64xf32>
    %356 = arith.addf %354, %355 : vector<8x64xf32>
    %357 = arith.negf %356 : vector<8x64xf32>
    %358 = math.exp %357 : vector<8x64xf32>
    %cst_111 = arith.constant 1.000000e+00 : f32
    %359 = vector.broadcast %cst_111 : f32 to vector<8x64xf32>
    %360 = arith.addf %359, %358 : vector<8x64xf32>
    %361 = arith.divf %359, %360 : vector<8x64xf32>
    %362 = vector.extract_strided_slice %361 {offsets = [0, 0], sizes = [8, 32], strides = [1, 1]} : vector<8x64xf32> to vector<8x32xf32>
    %363 = vector.extract_strided_slice %361 {offsets = [0, 32], sizes = [8, 32], strides = [1, 1]} : vector<8x64xf32> to vector<8x32xf32>
    %364 = vector.extract_strided_slice %349 {offsets = [0, 64], sizes = [8, 32], strides = [1, 1]} : vector<8x96xf32> to vector<8x32xf32>
    %365 = vector.extract_strided_slice %353 {offsets = [0, 64], sizes = [8, 32], strides = [1, 1]} : vector<8x96xf32> to vector<8x32xf32>
    %366 = arith.mulf %362, %365 : vector<8x32xf32>
    %367 = arith.addf %364, %366 : vector<8x32xf32>
    %368 = math.tanh %367 : vector<8x32xf32>
    %cst_112 = arith.constant 1.000000e+00 : f32
    %369 = vector.broadcast %cst_112 : f32 to vector<8x32xf32>
    %370 = arith.subf %369, %363 : vector<8x32xf32>
    %371 = arith.mulf %370, %368 : vector<8x32xf32>
    %372 = arith.mulf %363, %320 : vector<8x32xf32>
    %373 = arith.addf %371, %372 : vector<8x32xf32>
    %374 = arith.truncf %320 : vector<8x32xf32> to vector<8x32xbf16>
    %c1_113 = arith.constant 1 : index
    %c0_114 = arith.constant 0 : index
    %c0_115 = arith.constant 0 : index
    %375 = vector.load %arg3[%c1_113, %c0_114, %c0_115] : memref<2x32x96xbf16, #tpu.memory_space<vmem>>, vector<1x32x96xbf16>
    %376 = vector.shape_cast %375 : vector<1x32x96xbf16> to vector<32x96xbf16>
    %cst_116 = arith.constant dense<0.000000e+00> : vector<8x96xf32>
    %377 = tpu.matmul %374, %376, %cst_116 {dimension_numbers = #tpu.dot_dimension_numbers<[1], [0], [0], [1], [0, 0, 1, 1], [], []>} : vector<8x32xbf16>, vector<32x96xbf16>, vector<8x96xf32> -> vector<8x96xf32>
    %378 = arith.truncf %348 : vector<8x32xf32> to vector<8x32xbf16>
    %c1_117 = arith.constant 1 : index
    %c0_118 = arith.constant 0 : index
    %c0_119 = arith.constant 0 : index
    %379 = vector.load %arg4[%c1_117, %c0_118, %c0_119] : memref<2x32x96xbf16, #tpu.memory_space<vmem>>, vector<1x32x96xbf16>
    %380 = vector.shape_cast %379 : vector<1x32x96xbf16> to vector<32x96xbf16>
    %cst_120 = arith.constant dense<0.000000e+00> : vector<8x96xf32>
    %381 = tpu.matmul %378, %380, %cst_120 {dimension_numbers = #tpu.dot_dimension_numbers<[1], [0], [0], [1], [0, 0, 1, 1], [], []>} : vector<8x32xbf16>, vector<32x96xbf16>, vector<8x96xf32> -> vector<8x96xf32>
    %382 = vector.extract_strided_slice %377 {offsets = [0, 0], sizes = [8, 64], strides = [1, 1]} : vector<8x96xf32> to vector<8x64xf32>
    %383 = vector.extract_strided_slice %381 {offsets = [0, 0], sizes = [8, 64], strides = [1, 1]} : vector<8x96xf32> to vector<8x64xf32>
    %384 = arith.addf %382, %383 : vector<8x64xf32>
    %385 = arith.negf %384 : vector<8x64xf32>
    %386 = math.exp %385 : vector<8x64xf32>
    %cst_121 = arith.constant 1.000000e+00 : f32
    %387 = vector.broadcast %cst_121 : f32 to vector<8x64xf32>
    %388 = arith.addf %387, %386 : vector<8x64xf32>
    %389 = arith.divf %387, %388 : vector<8x64xf32>
    %390 = vector.extract_strided_slice %389 {offsets = [0, 0], sizes = [8, 32], strides = [1, 1]} : vector<8x64xf32> to vector<8x32xf32>
    %391 = vector.extract_strided_slice %389 {offsets = [0, 32], sizes = [8, 32], strides = [1, 1]} : vector<8x64xf32> to vector<8x32xf32>
    %392 = vector.extract_strided_slice %377 {offsets = [0, 64], sizes = [8, 32], strides = [1, 1]} : vector<8x96xf32> to vector<8x32xf32>
    %393 = vector.extract_strided_slice %381 {offsets = [0, 64], sizes = [8, 32], strides = [1, 1]} : vector<8x96xf32> to vector<8x32xf32>
    %394 = arith.mulf %390, %393 : vector<8x32xf32>
    %395 = arith.addf %392, %394 : vector<8x32xf32>
    %396 = math.tanh %395 : vector<8x32xf32>
    %cst_122 = arith.constant 1.000000e+00 : f32
    %397 = vector.broadcast %cst_122 : f32 to vector<8x32xf32>
    %398 = arith.subf %397, %391 : vector<8x32xf32>
    %399 = arith.mulf %398, %396 : vector<8x32xf32>
    %400 = arith.mulf %391, %348 : vector<8x32xf32>
    %401 = arith.addf %399, %400 : vector<8x32xf32>
    %402 = arith.truncf %373 : vector<8x32xf32> to vector<8x32xbf16>
    %c1_123 = arith.constant 1 : index
    %c0_124 = arith.constant 0 : index
    %c0_125 = arith.constant 0 : index
    %403 = vector.load %arg3[%c1_123, %c0_124, %c0_125] : memref<2x32x96xbf16, #tpu.memory_space<vmem>>, vector<1x32x96xbf16>
    %404 = vector.shape_cast %403 : vector<1x32x96xbf16> to vector<32x96xbf16>
    %cst_126 = arith.constant dense<0.000000e+00> : vector<8x96xf32>
    %405 = tpu.matmul %402, %404, %cst_126 {dimension_numbers = #tpu.dot_dimension_numbers<[1], [0], [0], [1], [0, 0, 1, 1], [], []>} : vector<8x32xbf16>, vector<32x96xbf16>, vector<8x96xf32> -> vector<8x96xf32>
    %406 = arith.truncf %401 : vector<8x32xf32> to vector<8x32xbf16>
    %c1_127 = arith.constant 1 : index
    %c0_128 = arith.constant 0 : index
    %c0_129 = arith.constant 0 : index
    %407 = vector.load %arg4[%c1_127, %c0_128, %c0_129] : memref<2x32x96xbf16, #tpu.memory_space<vmem>>, vector<1x32x96xbf16>
    %408 = vector.shape_cast %407 : vector<1x32x96xbf16> to vector<32x96xbf16>
    %cst_130 = arith.constant dense<0.000000e+00> : vector<8x96xf32>
    %409 = tpu.matmul %406, %408, %cst_130 {dimension_numbers = #tpu.dot_dimension_numbers<[1], [0], [0], [1], [0, 0, 1, 1], [], []>} : vector<8x32xbf16>, vector<32x96xbf16>, vector<8x96xf32> -> vector<8x96xf32>
    %410 = vector.extract_strided_slice %405 {offsets = [0, 0], sizes = [8, 64], strides = [1, 1]} : vector<8x96xf32> to vector<8x64xf32>
    %411 = vector.extract_strided_slice %409 {offsets = [0, 0], sizes = [8, 64], strides = [1, 1]} : vector<8x96xf32> to vector<8x64xf32>
    %412 = arith.addf %410, %411 : vector<8x64xf32>
    %413 = arith.negf %412 : vector<8x64xf32>
    %414 = math.exp %413 : vector<8x64xf32>
    %cst_131 = arith.constant 1.000000e+00 : f32
    %415 = vector.broadcast %cst_131 : f32 to vector<8x64xf32>
    %416 = arith.addf %415, %414 : vector<8x64xf32>
    %417 = arith.divf %415, %416 : vector<8x64xf32>
    %418 = vector.extract_strided_slice %417 {offsets = [0, 0], sizes = [8, 32], strides = [1, 1]} : vector<8x64xf32> to vector<8x32xf32>
    %419 = vector.extract_strided_slice %417 {offsets = [0, 32], sizes = [8, 32], strides = [1, 1]} : vector<8x64xf32> to vector<8x32xf32>
    %420 = vector.extract_strided_slice %405 {offsets = [0, 64], sizes = [8, 32], strides = [1, 1]} : vector<8x96xf32> to vector<8x32xf32>
    %421 = vector.extract_strided_slice %409 {offsets = [0, 64], sizes = [8, 32], strides = [1, 1]} : vector<8x96xf32> to vector<8x32xf32>
    %422 = arith.mulf %418, %421 : vector<8x32xf32>
    %423 = arith.addf %420, %422 : vector<8x32xf32>
    %424 = math.tanh %423 : vector<8x32xf32>
    %cst_132 = arith.constant 1.000000e+00 : f32
    %425 = vector.broadcast %cst_132 : f32 to vector<8x32xf32>
    %426 = arith.subf %425, %419 : vector<8x32xf32>
    %427 = arith.mulf %426, %424 : vector<8x32xf32>
    %428 = arith.mulf %419, %401 : vector<8x32xf32>
    %429 = arith.addf %427, %428 : vector<8x32xf32>
    %430 = tpu.concatenate %83, %136, %189, %242, %295, %348, %401, %429 in 0 : vector<8x32xf32>, vector<8x32xf32>, vector<8x32xf32>, vector<8x32xf32>, vector<8x32xf32>, vector<8x32xf32>, vector<8x32xf32>, vector<8x32xf32> -> vector<64x32xf32>
    %431 = arith.truncf %430 : vector<64x32xf32> to vector<64x32xbf16>
    %c0_133 = arith.constant 0 : index
    %c0_134 = arith.constant 0 : index
    %432 = vector.load %arg5[%c0_133, %c0_134] : memref<32x32xbf16, #tpu.memory_space<vmem>>, vector<32x32xbf16>
    %cst_135 = arith.constant dense<0.000000e+00> : vector<64x32xf32>
    %433 = tpu.matmul %431, %432, %cst_135 {dimension_numbers = #tpu.dot_dimension_numbers<[1], [0], [0], [1], [0, 0, 1, 1], [], []>} : vector<64x32xbf16>, vector<32x32xbf16>, vector<64x32xf32> -> vector<64x32xf32>
    %c0_136 = arith.constant 0 : index
    %c0_137 = arith.constant 0 : index
    %434 = vector.load %arg6[%c0_136, %c0_137] : memref<1x32xf32, #tpu.memory_space<vmem>>, vector<1x32xf32>
    %435 = vector.broadcast %434 : vector<1x32xf32> to vector<64x32xf32>
    %436 = arith.addf %433, %435 : vector<64x32xf32>
    %c0_138 = arith.constant 0 : index
    %c0_139 = arith.constant 0 : index
    %437 = vector.load %arg1[%c0_138, %c0_139] : memref<64x32xf32, #tpu.memory_space<vmem>>, vector<64x32xf32>
    %c0_140 = arith.constant 0 : index
    %c0_141 = arith.constant 0 : index
    %438 = vector.load %arg2[%c0_140, %c0_141] : memref<64x32xf32, #tpu.memory_space<vmem>>, vector<64x32xf32>
    %439 = arith.subf %437, %438 : vector<64x32xf32>
    %440 = arith.mulf %439, %436 : vector<64x32xf32>
    %cst_142 = arith.constant dense<0.000000e+00> : vector<64xf32>
    %441 = vector.multi_reduction <add>, %440, %cst_142 [1] : vector<64x32xf32> to vector<64xf32>
    %442 = vector.shape_cast %441 : vector<64xf32> to vector<64x1xf32>
    %443 = arith.negf %442 : vector<64x1xf32>
    %444 = math.exp %443 : vector<64x1xf32>
    %cst_143 = arith.constant 1.000000e+00 : f32
    %445 = vector.broadcast %cst_143 : f32 to vector<64x1xf32>
    %446 = arith.addf %445, %444 : vector<64x1xf32>
    %447 = arith.divf %445, %446 : vector<64x1xf32>
    %cst_144 = arith.constant 1.000000e-10 : f32
    %448 = vector.broadcast %cst_144 : f32 to vector<64x1xf32>
    %449 = arith.addf %448, %447 : vector<64x1xf32>
    %450 = math.log %449 : vector<64x1xf32>
    %cst_145 = arith.constant 0.000000e+00 : f32
    %451 = vector.broadcast %cst_145 : f32 to vector<64x1xf32>
    %452 = arith.subf %451, %450 : vector<64x1xf32>
    %453 = vector.shape_cast %452 : vector<64x1xf32> to vector<1x64x1xf32>
    %cst_146 = arith.constant dense<0.000000e+00> : vector<1xf32>
    %454 = vector.multi_reduction <add>, %453, %cst_146 [1, 2] : vector<1x64x1xf32> to vector<1xf32>
    %455 = vector.shape_cast %454 : vector<1xf32> to vector<1x1x1xf32>
    %456 = vector.extract %455[0, 0, 0] : f32 from vector<1x1x1xf32>
    %cst_147 = arith.constant 6.400000e+01 : f32
    %457 = arith.divf %456, %cst_147 : f32
    %c0_148 = arith.constant 0 : index
    %c0_149 = arith.constant 0 : index
    %458 = memref.load %arg7[%c0_148, %c0_149] : memref<1x1xf32, #tpu.memory_space<smem>>
    memref.store %457, %arg7[%c0_148, %c0_149] : memref<1x1xf32, #tpu.memory_space<smem>>
    return
  }
}

</mosaic_0001>

<bundles_post_ra>
// kernel: tpu_custom_call.1
= control target key start
LH: loop header
LB: loop body
LE: loop exit
PB: predicated region body
PF: predicated region fallthrough
CT: control target
= control target key end

     0   :  { %vm72_vm0 = vcmask 261120   ;;  %v2536_v7 = vmov 0.0   ;;  %vm2537_vm1 = vmmov 0   ;;  %s3042_s0 = inlined_call_operand.vmem [shape: bf16[64,32], index: 0, kind: input, shape index: {}]   ;;  %s3043_s1 = inlined_call_operand.vmem [shape: f32[64,32], index: 1, kind: input, shape index: {}]   ;;  %s3044_s2 = inlined_call_operand.vmem [shape: f32[64,32], index: 2, kind: input, shape index: {}]   ;;  %s3045_s3 = inlined_call_operand.vmem [shape: bf16[2,32,96], index: 3, kind: input, shape index: {}]   ;;  %s3046_s4 = inlined_call_operand.vmem [shape: bf16[2,32,96], index: 4, kind: input, shape index: {}]   ;;  %s3047_s5 = inlined_call_operand.vmem [shape: bf16[32,32], index: 5, kind: input, shape index: {}]   ;;  %s3048_s6 = inlined_call_operand.vmem [shape: f32[1,32], index: 6, kind: input, shape index: {}]   ;;  %s3049_s7 = inlined_call_operand.hbm [shape: f32[1,1], index: 7, kind: output, shape index: {}]  }
   0x1   :  { %v2368_v0 = vld [vmem:[%s3045_s3 + $0x8] sm:$0xff]   ;;  %v2369_v1 = vld [vmem:[%s3045_s3] sm:$0xff]   ;;  %v2370_v2 = vld [vmem:[%s3042_s0 + $0x10] sm:$0xff]  }
   0x2   :  { %2356 = vmatprep.subr.bf16.mxu1 %v2368_v0  ;;  %2140 = vmatprep.subr.bf16.mxu0 %v2368_v0  ;;  %v2371_v3 = vld [vmem:[%s3042_s0 + $0x18] sm:$0xff]   ;;  %v2598_v4 = vld [vmem:[%s3046_s4 + $0x8] sm:$0xff]   ;;  %v2374_v5 = vld [vmem:[%s3042_s0] sm:$0xff]  }
   0x3   :  { %2358 = vmatpush3.bf16.msra.mxu1 %v2368_v0  ;;  %2141 = vmatpush3.bf16.msra.mxu0 %v2368_v0  ;;  %v2375_v6 = vld [vmem:[%s3042_s0 + $0x8] sm:$0xff]   ;;  %v2611_v8 = vld [vmem:[%s3046_s4] sm:$0xff]  }
   0x4   :  { %2357 = vmatprep.subr.bf16.mxu1 %v2369_v1  ;;  %2148 = vmatprep.mubr.msk.bf16.mxu1 %vm72_vm0, %v2370_v2 }
   0x5   :  { %2142 = vmatprep.subr.bf16.mxu0 %v2369_v1  ;;  %2144 = vmatprep.mubr.msk.bf16.mxu0 %vm72_vm0, %v2374_v5 }
   0x7   :  { %2359 = vmatpush3.bf16.msra.mxu1 %v2369_v1  ;;  %2143 = vmatpush3.bf16.msra.mxu0 %v2369_v1 }
   0x8   :  { %2152 = vmatprep.subr.bf16.mxu1 %v2536_v7  ;;  %2168 = vmatprep.subr.bf16.mxu0 %v2536_v7 }
   0xa   :  { %2149 = vmatmul.mubr.msk.bf16.vlgmr.msra.gmra.mxu1 %vm72_vm0, %v2371_v3  ;;  %2145 = vmatmul.mubr.msk.bf16.vlgmr.msra.gmra.mxu0 %vm72_vm0, %v2375_v6 }
   0xb   :  { %2153 = vmatpush3.bf16.msra.mxu1 %v2598_v4  ;;  %2156 = vmatprep.mubr.msk.bf16.mxu1 %vm2537_vm1, %v2536_v7 }
   0xc   :  { %2154 = vmatprep.subr.bf16.mxu1 %v2536_v7  ;;  %2172 = vmatprep.mubr.msk.bf16.mxu0 %vm2537_vm1, %v2536_v7 }
   0xd   :  { %12 = vsyncpa [#allocation3], 0  ;;  %v2538_v9 = vmov 0   ;;  %s2539_s0 = smov 64   ;;  %v2645_v29 = vld [vmem:[%s3045_s3 + $0x18] sm:$0xff]   ;;  %v2651_v30 = vld [vmem:[%s3045_s3 + $0x10] sm:$0xff]  }
   0xe   :  { %2169 = vmatpush3.bf16.msra.mxu0 %v2645_v29  ;;  %s2540_s21 = smov 96   ;;  %v2665_v38 = vld [vmem:[%s3046_s4 + $0x18] sm:$0xff]   ;;  %v2673_v40 = vld [vmem:[%s3046_s4 + $0x10] sm:$0xff]   ;;  %vm1936_vm2 = vcmask 7168   ;;  %s2541_s10 = smov [#allocation2]  }
   0xf   :  { %2155 = vmatpush3.bf16.msra.mxu1 %v2611_v8  ;;  %2170 = vmatprep.subr.bf16.mxu0 %v2536_v7 }
  0x10   :  { %2160 = vmatprep.subr.bf16.mxu1 %v2536_v7 }
  0x12   :  { %2157 = vmatmul.mubr.bf16.vlgmr.msra.gmra.mxu1 %v2538_v9  ;;  %2171 = vmatpush3.bf16.msra.mxu0 %v2651_v30 }
  0x13   :  { %2161 = vmatpush3.bf16.msra.mxu1 %v2598_v4  ;;  %2164 = vmatprep.mubr.msk.bf16.mxu1 %vm2537_vm1, %v2536_v7 }
  0x14   :  { %2162 = vmatprep.subr.bf16.mxu1 %v2536_v7  ;;  %2184 = vmatprep.subr.bf16.mxu0 %v2536_v7 }
  0x17   :  { %2163 = vmatpush3.bf16.msra.mxu1 %v2611_v8 }
  0x18   :  { %2176 = vmatprep.subr.bf16.mxu1 %v2536_v7 }
  0xca   :  { %v2630_v10 = vpop.f32.mrf.mxu1  ;;  %v2639_v18 = vpop.f32.mrf.mxu0 }
  0xcc   :  { %v2632_v11 = vpop.f32.mrf.mxu1  ;;  %v119_v19 = vpop.f32.mrf.mxu0 }
  0xce   :  { %v2634_v12 = vpop.f32.mrf.mxu1  ;;  %v2692_v41 = vpop.f32.mrf.mxu0 }
  0xd0   :  { %v2636_v13 = vpop.f32.mrf.mxu1  ;;  %v122_v42 = vpop.f32.mrf.mxu0 }
  0xd2   :  { %v203_v14 = vpop.f32.mrf.mxu1 }
  0xd3   :  { %217 = vrot.lane.b32.xlu0 %v203_v14, %s2539_s0  ;;  %v209_v20 = vadd.f32 %v203_v14, %v119_v19 }
  0xd4   :  { %v2158_v15 = vpop.f32.mrf.mxu1 }
  0xd5   :  { %v1991_v21 = vmul.f32 -1.442695, %v209_v20 }
  0xd6   :  { %v206_v16 = vpop.f32.mrf.mxu1 }
  0xd7   :  { %2382 = vpow2.f32 %v1991_v21 }
  0xd8   :  { %v2159_v17 = vpop.f32.mrf.mxu1 }
  0xe4   :  { %v2383_v22 = vpop.eup %2382 }
  0xe5   :  { %v213_v23 = vadd.f32 1.0, %v2383_v22 }
  0xe7   :  { %2384 = vrcp.f32 %v213_v23 }
  0xf4   :  { %v2385_v24 = vpop.eup %2384 }
  0xf5   :  { %v227_v32 = vsub.f32 1.0, %v2385_v24  ;;  %v233_v34 = vmul.f32 0.0, %v2385_v24 }
 0x145   :  { %v218_v25 = vpop.permute.xlu0 %217 }
 0x146   :  { %v220_v26 = vmul.f32 %v2385_v24, %v218_v25 }
 0x148   :  { %222 = vrot.lane.b32.xlu0 %v220_v26, %s2539_s0 }
 0x1ba   :  { %v223_v27 = vpop.permute.xlu0 %222 }
 0x1bb   :  { %v225_v28 = vadd.f32 %v223_v27, %v119_v19 }
 0x1bd   :  { %2386 = vtanh.f32 %v225_v28 }
 0x1ca   :  { %v2387_v31 = vpop.eup %2386 }
 0x1cb   :  { %229 = vrot.lane.b32.xlu1 %v2387_v31, %s2540_s21 }
 0x23d   :  { %v230_v33 = vpop.permute.xlu1 %229 }
 0x23e   :  { %v232_v35 = vmul.f32 %v230_v33, %v227_v32 }
 0x240   :  { %v2657_v36 = vadd.f32 %v233_v34, %v232_v35 }
 0x242   :  { %v235_v37 = vpack.c.bf16 %v2657_v36, %v2657_v36 }
 0x244   :  { %237 = vrot.lane.b32.xlu1 %v235_v37, %s2540_s21 }
 0x2b6   :  { %v238_v39 = vpop.permute.xlu1 %237 }
 0x2b7   :  { %2165 = vmatmul.mubr.msk.bf16.vlgmr.msra.gmra.mxu1 %vm72_vm0, %v238_v39  ;;  %2173 = vmatmul.mubr.msk.bf16.vlgmr.msra.gmra.mxu0 %vm72_vm0, %v238_v39 }
 0x2b8   :  { %2177 = vmatpush3.bf16.msra.mxu1 %v2665_v38  ;;  %2180 = vmatprep.mubr.msk.bf16.mxu1 %vm2537_vm1, %v2536_v7 }
 0x2b9   :  { %2178 = vmatprep.subr.bf16.mxu1 %v2536_v7  ;;  %2185 = vmatpush3.bf16.msra.mxu0 %v2598_v4 }
 0x2ba   :  { %2186 = vmatprep.subr.bf16.mxu0 %v2536_v7  ;;  %2188 = vmatprep.mubr.msk.bf16.mxu0 %vm2537_vm1, %v2536_v7 }
 0x2bc   :  { %2179 = vmatpush3.bf16.msra.mxu1 %v2673_v40 }
 0x2bd   :  { %2192 = vmatprep.subr.bf16.mxu1 %v2536_v7  ;;  %2187 = vmatpush3.bf16.msra.mxu0 %v2611_v8 }
 0x2be   :  { %2200 = vmatprep.subr.bf16.mxu0 %v2536_v7 }
 0x2bf   :  { %2181 = vmatmul.mubr.bf16.vlgmr.msra.gmra.mxu1 %v2538_v9 }
 0x2c0   :  { %2193 = vmatpush3.bf16.msra.mxu1 %v2645_v29  ;;  %2196 = vmatprep.mubr.msk.bf16.mxu1 %vm2537_vm1, %v2536_v7 }
 0x2c1   :  { %2194 = vmatprep.subr.bf16.mxu1 %v2536_v7 }
 0x2c4   :  { %2195 = vmatpush3.bf16.msra.mxu1 %v2651_v30 }
 0x2c5   :  { %2208 = vmatprep.subr.bf16.mxu1 %v2536_v7 }
 0x377   :  { %v276_v43 = vpop.f32.mrf.mxu1  ;;  %v359_v44 = vpop.f32.mrf.mxu0 }
 0x378   :  { %290 = vrot.lane.b32.xlu0 %v276_v43, %s2539_s0  ;;  %v282_v55 = vadd.f32 %v276_v43, %v122_v42 }
 0x379   :  { %v2166_v45 = vpop.f32.mrf.mxu1  ;;  %v2174_v46 = vpop.f32.mrf.mxu0 }
 0x37a   :  { %v1993_v56 = vmul.f32 -1.442695, %v282_v55 }
 0x37b   :  { %v279_v47 = vpop.f32.mrf.mxu1  ;;  %v362_v48 = vpop.f32.mrf.mxu0 }
 0x37c   :  { %2388 = vpow2.f32 %v1993_v56 }
 0x37d   :  { %v2167_v49 = vpop.f32.mrf.mxu1  ;;  %v2175_v50 = vpop.f32.mrf.mxu0 }
 0x37f   :  { %v416_v51 = vpop.f32.mrf.mxu1 }
 0x380   :  { %430 = vrot.lane.b32.xlu1 %v416_v51, %s2539_s0  ;;  %v422_v57 = vadd.f32 %v416_v51, %v359_v44 }
 0x381   :  { %v2182_v52 = vpop.f32.mrf.mxu1 }
 0x382   :  { %v2007_v58 = vmul.f32 -1.442695, %v422_v57 }
 0x383   :  { %v419_v53 = vpop.f32.mrf.mxu1 }
 0x384   :  { %2390 = vpow2.f32 %v2007_v58 }
 0x385   :  { %v2183_v54 = vpop.f32.mrf.mxu1 }
 0x389   :  { %v2389_v59 = vpop.eup %2388 }
 0x38a   :  { %v286_v60 = vadd.f32 1.0, %v2389_v59 }
 0x38c   :  { %2392 = vrcp.f32 %v286_v60 }
 0x391   :  { %v2391_v61 = vpop.eup %2390 }
 0x392   :  { %v426_v62 = vadd.f32 1.0, %v2391_v61 }
 0x394   :  { %2394 = vrcp.f32 %v426_v62 }
 0x399   :  { %v2393_v63 = vpop.eup %2392 }
 0x39a   :  { %v300_v19 = vsub.f32 1.0, %v2393_v63  ;;  %v306_v21 = vmul.f32 %v2393_v63, %v2657_v36 }
 0x3a1   :  { %v2395_v2 = vpop.eup %2394 }
 0x3a2   :  { %v440_v25 = vsub.f32 1.0, %v2395_v2  ;;  %v446_v27 = vmul.f32 0.0, %v2395_v2 }
 0x3ea   :  { %v291_v0 = vpop.permute.xlu0 %290 }
 0x3eb   :  { %v293_v1 = vmul.f32 %v2393_v63, %v291_v0 }
 0x3ed   :  { %295 = vrot.lane.b32.xlu0 %v293_v1, %s2539_s0 }
 0x3f2   :  { %v431_v3 = vpop.permute.xlu1 %430 }
 0x3f3   :  { %v433_v5 = vmul.f32 %v2395_v2, %v431_v3 }
 0x3f5   :  { %435 = vrot.lane.b32.xlu1 %v433_v5, %s2539_s0 }
 0x45f   :  { %v296_v6 = vpop.permute.xlu0 %295 }
 0x460   :  { %v298_v9 = vadd.f32 %v296_v6, %v122_v42 }
 0x462   :  { %2396 = vtanh.f32 %v298_v9 }
 0x467   :  { %v436_v14 = vpop.permute.xlu1 %435 }
 0x468   :  { %v438_v15 = vadd.f32 %v436_v14, %v359_v44 }
 0x46a   :  { %2398 = vtanh.f32 %v438_v15 }
 0x46f   :  { %v2397_v16 = vpop.eup %2396 }
 0x470   :  { %302 = vrot.lane.b32.xlu0 %v2397_v16, %s2540_s21 }
 0x477   :  { %v2399_v17 = vpop.eup %2398 }
 0x478   :  { %442 = vrot.lane.b32.xlu1 %v2399_v17, %s2540_s21 }
 0x4e2   :  { %v303_v20 = vpop.permute.xlu0 %302 }
 0x4e3   :  { %v305_v22 = vmul.f32 %v303_v20, %v300_v19 }
 0x4e5   :  { %v2701_v23 = vadd.f32 %v306_v21, %v305_v22 }
 0x4e7   :  { %v448_v24 = vpack.c.bf16 %v2701_v23, %v2701_v23 }
 0x4e9   :  { %450 = vrot.lane.b32.xlu0 %v448_v24, %s2540_s21 }
 0x4ea   :  { %v443_v26 = vpop.permute.xlu1 %442 }
 0x4eb   :  { %v445_v28 = vmul.f32 %v443_v26, %v440_v25 }
 0x4ed   :  { %v2706_v31 = vadd.f32 %v446_v27, %v445_v28 }
 0x4ef   :  { %v561_v32 = vpack.c.bf16 %v2706_v31, %v2706_v31 }
 0x4f1   :  { %563 = vrot.lane.b32.xlu1 %v561_v32, %s2540_s21 }
 0x55b   :  { %v451_v33 = vpop.permute.xlu0 %450 }
 0x55c   :  { %2189 = vmatmul.mubr.msk.bf16.vlgmr.msra.gmra.mxu0 %vm72_vm0, %v451_v33  ;;  %2197 = vmatmul.mubr.msk.bf16.vlgmr.msra.gmra.mxu1 %vm72_vm0, %v451_v33 }
 0x55d   :  { %2201 = vmatpush3.bf16.msra.mxu0 %v2665_v38  ;;  %2204 = vmatprep.mubr.msk.bf16.mxu0 %vm2537_vm1, %v2536_v7 }
 0x55e   :  { %2202 = vmatprep.subr.bf16.mxu0 %v2536_v7  ;;  %2209 = vmatpush3.bf16.msra.mxu1 %v2598_v4 }
 0x55f   :  { %2210 = vmatprep.subr.bf16.mxu1 %v2536_v7  ;;  %2212 = vmatprep.mubr.msk.bf16.mxu1 %vm2537_vm1, %v2536_v7 }
 0x561   :  { %2203 = vmatpush3.bf16.msra.mxu0 %v2673_v40 }
 0x562   :  { %2216 = vmatprep.subr.bf16.mxu0 %v2536_v7  ;;  %2211 = vmatpush3.bf16.msra.mxu1 %v2611_v8 }
 0x563   :  { %v564_v34 = vpop.permute.xlu1 %563  ;;  %2224 = vmatprep.subr.bf16.mxu1 %v2536_v7 }
 0x564   :  { %2205 = vmatmul.mubr.msk.bf16.vlgmr.msra.gmra.mxu0 %vm72_vm0, %v564_v34 }
 0x565   :  { %2217 = vmatpush3.bf16.msra.mxu0 %v2645_v29  ;;  %2220 = vmatprep.mubr.msk.bf16.mxu0 %vm2537_vm1, %v2536_v7 }
 0x566   :  { %2218 = vmatprep.subr.bf16.mxu0 %v2536_v7 }
 0x569   :  { %2219 = vmatpush3.bf16.msra.mxu0 %v2651_v30 }
 0x56a   :  { %2232 = vmatprep.subr.bf16.mxu0 %v2536_v7 }
 0x61c   :  { %v489_v35 = vpop.f32.mrf.mxu0  ;;  %v555_v36 = vpop.f32.mrf.mxu1 }
 0x61d   :  { %503 = vrot.lane.b32.xlu0 %v489_v35, %s2539_s0  ;;  %v495_v50 = vadd.f32 %v2639_v18, %v489_v35 }
 0x61e   :  { %v2190_v37 = vpop.f32.mrf.mxu0  ;;  %v2198_v39 = vpop.f32.mrf.mxu1 }
 0x61f   :  { %v2009_v51 = vmul.f32 -1.442695, %v495_v50 }
 0x620   :  { %v492_v42 = vpop.f32.mrf.mxu0  ;;  %v558_v43 = vpop.f32.mrf.mxu1 }
 0x621   :  { %2400 = vpow2.f32 %v2009_v51 }
 0x622   :  { %v2191_v44 = vpop.f32.mrf.mxu0  ;;  %v2199_v45 = vpop.f32.mrf.mxu1 }
 0x624   :  { %v602_v46 = vpop.f32.mrf.mxu0 }
 0x625   :  { %616 = vrot.lane.b32.xlu1 %v602_v46, %s2539_s0  ;;  %v608_v52 = vadd.f32 %v602_v46, %v555_v36 }
 0x626   :  { %v2206_v47 = vpop.f32.mrf.mxu0 }
 0x627   :  { %v2012_v53 = vmul.f32 -1.442695, %v608_v52 }
 0x628   :  { %v605_v48 = vpop.f32.mrf.mxu0 }
 0x629   :  { %2402 = vpow2.f32 %v2012_v53 }
 0x62a   :  { %v2207_v49 = vpop.f32.mrf.mxu0 }
 0x62e   :  { %v2401_v54 = vpop.eup %2400 }
 0x62f   :  { %v499_v55 = vadd.f32 1.0, %v2401_v54 }
 0x631   :  { %2404 = vrcp.f32 %v499_v55 }
 0x636   :  { %v2403_v56 = vpop.eup %2402 }
 0x637   :  { %v612_v57 = vadd.f32 1.0, %v2403_v56 }
 0x639   :  { %2406 = vrcp.f32 %v612_v57 }
 0x63e   :  { %v2405_v58 = vpop.eup %2404 }
 0x63f   :  { %v513_v9 = vsub.f32 1.0, %v2405_v58  ;;  %v519_v15 = vmul.f32 %v2405_v58, %v2701_v23 }
 0x646   :  { %v2407_v61 = vpop.eup %2406 }
 0x647   :  { %v626_v19 = vsub.f32 1.0, %v2407_v61  ;;  %v632_v21 = vmul.f32 %v2407_v61, %v2706_v31 }
 0x68f   :  { %v504_v59 = vpop.permute.xlu0 %503 }
 0x690   :  { %v506_v60 = vmul.f32 %v2405_v58, %v504_v59 }
 0x692   :  { %508 = vrot.lane.b32.xlu0 %v506_v60, %s2539_s0 }
 0x697   :  { %v617_v62 = vpop.permute.xlu1 %616 }
 0x698   :  { %v619_v63 = vmul.f32 %v2407_v61, %v617_v62 }
 0x69a   :  { %621 = vrot.lane.b32.xlu1 %v619_v63, %s2539_s0 }
 0x704   :  { %v509_v0 = vpop.permute.xlu0 %508 }
 0x705   :  { %v511_v1 = vadd.f32 %v2639_v18, %v509_v0 }
 0x707   :  { %2408 = vtanh.f32 %v511_v1 }
 0x70c   :  { %v622_v2 = vpop.permute.xlu1 %621 }
 0x70d   :  { %v624_v3 = vadd.f32 %v622_v2, %v555_v36 }
 0x70f   :  { %2410 = vtanh.f32 %v624_v3 }
 0x714   :  { %v2409_v5 = vpop.eup %2408 }
 0x715   :  { %515 = vrot.lane.b32.xlu0 %v2409_v5, %s2540_s21 }
 0x71c   :  { %v2411_v6 = vpop.eup %2410 }
 0x71d   :  { %628 = vrot.lane.b32.xlu1 %v2411_v6, %s2540_s21 }
 0x787   :  { %v516_v14 = vpop.permute.xlu0 %515 }
 0x788   :  { %v518_v16 = vmul.f32 %v516_v14, %v513_v9 }
 0x78a   :  { %v2741_v17 = vadd.f32 %v519_v15, %v518_v16 }
 0x78c   :  { %v634_v18 = vpack.c.bf16 %v2741_v17, %v2741_v17 }
 0x78e   :  { %636 = vrot.lane.b32.xlu0 %v634_v18, %s2540_s21 }
 0x78f   :  { %v629_v20 = vpop.permute.xlu1 %628 }
 0x790   :  { %v631_v22 = vmul.f32 %v629_v20, %v626_v19 }
 0x792   :  { %v2747_v24 = vadd.f32 %v632_v21, %v631_v22 }
 0x794   :  { %v747_v25 = vpack.c.bf16 %v2747_v24, %v2747_v24 }
 0x796   :  { %749 = vrot.lane.b32.xlu1 %v747_v25, %s2540_s21 }
 0x800   :  { %v637_v23 = vpop.permute.xlu0 %636 }
 0x801   :  { %2213 = vmatmul.mubr.msk.bf16.vlgmr.msra.gmra.mxu1 %vm72_vm0, %v637_v23  ;;  %2221 = vmatmul.mubr.msk.bf16.vlgmr.msra.gmra.mxu0 %vm72_vm0, %v637_v23 }
 0x802   :  { %2225 = vmatpush3.bf16.msra.mxu1 %v2665_v38  ;;  %2228 = vmatprep.mubr.msk.bf16.mxu1 %vm2537_vm1, %v2536_v7 }
 0x803   :  { %2226 = vmatprep.subr.bf16.mxu1 %v2536_v7  ;;  %2233 = vmatpush3.bf16.msra.mxu0 %v2598_v4 }
 0x804   :  { %2234 = vmatprep.subr.bf16.mxu0 %v2536_v7  ;;  %2236 = vmatprep.mubr.msk.bf16.mxu0 %vm2537_vm1, %v2536_v7 }
 0x806   :  { %2227 = vmatpush3.bf16.msra.mxu1 %v2673_v40 }
 0x807   :  { %2240 = vmatprep.subr.bf16.mxu1 %v2536_v7  ;;  %2235 = vmatpush3.bf16.msra.mxu0 %v2611_v8 }
 0x808   :  { %v750_v26 = vpop.permute.xlu1 %749  ;;  %2248 = vmatprep.subr.bf16.mxu0 %v2536_v7 }
 0x809   :  { %2229 = vmatmul.mubr.msk.bf16.vlgmr.msra.gmra.mxu1 %vm72_vm0, %v750_v26 }
 0x80a   :  { %2241 = vmatpush3.bf16.msra.mxu1 %v2645_v29  ;;  %2244 = vmatprep.mubr.msk.bf16.mxu1 %vm2537_vm1, %v2536_v7 }
 0x80b   :  { %2242 = vmatprep.subr.bf16.mxu1 %v2536_v7 }
 0x80e   :  { %2243 = vmatpush3.bf16.msra.mxu1 %v2651_v30 }
 0x80f   :  { %2256 = vmatprep.subr.bf16.mxu1 %v2536_v7 }
 0x8c1   :  { %v675_v27 = vpop.f32.mrf.mxu1  ;;  %v741_v28 = vpop.f32.mrf.mxu0 }
 0x8c2   :  { %689 = vrot.lane.b32.xlu0 %v675_v27, %s2539_s0  ;;  %v681_v45 = vadd.f32 %v2692_v41, %v675_v27 }
 0x8c3   :  { %v2214_v32 = vpop.f32.mrf.mxu1  ;;  %v2222_v33 = vpop.f32.mrf.mxu0 }
 0x8c4   :  { %v2014_v46 = vmul.f32 -1.442695, %v681_v45 }
 0x8c5   :  { %v678_v34 = vpop.f32.mrf.mxu1  ;;  %v744_v35 = vpop.f32.mrf.mxu0 }
 0x8c6   :  { %2412 = vpow2.f32 %v2014_v46 }
 0x8c7   :  { %v2215_v36 = vpop.f32.mrf.mxu1  ;;  %v2223_v37 = vpop.f32.mrf.mxu0 }
 0x8c9   :  { %v788_v39 = vpop.f32.mrf.mxu1 }
 0x8ca   :  { %802 = vrot.lane.b32.xlu1 %v788_v39, %s2539_s0  ;;  %v794_v47 = vadd.f32 %v788_v39, %v741_v28 }
 0x8cb   :  { %v2230_v42 = vpop.f32.mrf.mxu1 }
 0x8cc   :  { %v2017_v48 = vmul.f32 -1.442695, %v794_v47 }
 0x8cd   :  { %v791_v43 = vpop.f32.mrf.mxu1 }
 0x8ce   :  { %2414 = vpow2.f32 %v2017_v48 }
 0x8cf   :  { %v2231_v44 = vpop.f32.mrf.mxu1 }
 0x8d3   :  { %v2413_v49 = vpop.eup %2412 }
 0x8d4   :  { %v685_v50 = vadd.f32 1.0, %v2413_v49 }
 0x8d6   :  { %2416 = vrcp.f32 %v685_v50 }
 0x8db   :  { %v2415_v51 = vpop.eup %2414 }
 0x8dc   :  { %v798_v52 = vadd.f32 1.0, %v2415_v51 }
 0x8de   :  { %2418 = vrcp.f32 %v798_v52 }
 0x8e3   :  { %v2417_v53 = vpop.eup %2416 }
 0x8e4   :  { %v699_v1 = vsub.f32 1.0, %v2417_v53  ;;  %v705_v3 = vmul.f32 %v2417_v53, %v2741_v17 }
 0x8eb   :  { %v2419_v56 = vpop.eup %2418 }
 0x8ec   :  { %v812_v9 = vsub.f32 1.0, %v2419_v56  ;;  %v818_v15 = vmul.f32 %v2419_v56, %v2747_v24 }
 0x934   :  { %v690_v54 = vpop.permute.xlu0 %689 }
 0x935   :  { %v692_v55 = vmul.f32 %v2417_v53, %v690_v54 }
 0x937   :  { %694 = vrot.lane.b32.xlu0 %v692_v55, %s2539_s0 }
 0x93c   :  { %v803_v57 = vpop.permute.xlu1 %802 }
 0x93d   :  { %v805_v58 = vmul.f32 %v2419_v56, %v803_v57 }
 0x93f   :  { %807 = vrot.lane.b32.xlu1 %v805_v58, %s2539_s0 }
 0x9a9   :  { %v695_v59 = vpop.permute.xlu0 %694 }
 0x9aa   :  { %v697_v60 = vadd.f32 %v2692_v41, %v695_v59 }
 0x9ac   :  { %2420 = vtanh.f32 %v697_v60 }
 0x9b1   :  { %v808_v61 = vpop.permute.xlu1 %807 }
 0x9b2   :  { %v810_v62 = vadd.f32 %v808_v61, %v741_v28 }
 0x9b4   :  { %2422 = vtanh.f32 %v810_v62 }
 0x9b9   :  { %v2421_v63 = vpop.eup %2420 }
 0x9ba   :  { %701 = vrot.lane.b32.xlu0 %v2421_v63, %s2540_s21 }
 0x9c1   :  { %v2423_v0 = vpop.eup %2422 }
 0x9c2   :  { %814 = vrot.lane.b32.xlu1 %v2423_v0, %s2540_s21 }
 0xa2c   :  { %v702_v2 = vpop.permute.xlu0 %701 }
 0xa2d   :  { %v704_v5 = vmul.f32 %v702_v2, %v699_v1 }
 0xa2f   :  { %v2782_v6 = vadd.f32 %v705_v3, %v704_v5 }
 0xa31   :  { %v820_v41 = vpack.c.bf16 %v2782_v6, %v2782_v6 }
 0xa33   :  { %822 = vrot.lane.b32.xlu0 %v820_v41, %s2540_s21 }
 0xa34   :  { %v815_v14 = vpop.permute.xlu1 %814 }
 0xa35   :  { %v817_v16 = vmul.f32 %v815_v14, %v812_v9 }
 0xa37   :  { %v2788_v18 = vadd.f32 %v818_v15, %v817_v16 }
 0xa39   :  { %v933_v19 = vpack.c.bf16 %v2788_v18, %v2788_v18 }
 0xa3b   :  { %935 = vrot.lane.b32.xlu1 %v933_v19, %s2540_s21 }
 0xaa5   :  { %v823_v17 = vpop.permute.xlu0 %822 }
 0xaa6   :  { %2237 = vmatmul.mubr.msk.bf16.vlgmr.msra.gmra.mxu0 %vm72_vm0, %v823_v17  ;;  %2245 = vmatmul.mubr.msk.bf16.vlgmr.msra.gmra.mxu1 %vm72_vm0, %v823_v17 }
 0xaa7   :  { %2249 = vmatpush3.bf16.msra.mxu0 %v2665_v38  ;;  %2252 = vmatprep.mubr.msk.bf16.mxu0 %vm2537_vm1, %v2536_v7 }
 0xaa8   :  { %2250 = vmatprep.subr.bf16.mxu0 %v2536_v7  ;;  %2257 = vmatpush3.bf16.msra.mxu1 %v2598_v4 }
 0xaa9   :  { %2258 = vmatprep.subr.bf16.mxu1 %v2536_v7  ;;  %2260 = vmatprep.mubr.msk.bf16.mxu1 %vm2537_vm1, %v2536_v7 }
 0xaab   :  { %2251 = vmatpush3.bf16.msra.mxu0 %v2673_v40 }
 0xaac   :  { %2264 = vmatprep.subr.bf16.mxu0 %v2536_v7  ;;  %2259 = vmatpush3.bf16.msra.mxu1 %v2611_v8 }
 0xaad   :  { %v936_v20 = vpop.permute.xlu1 %935  ;;  %2272 = vmatprep.subr.bf16.mxu1 %v2536_v7 }
 0xaae   :  { %2253 = vmatmul.mubr.msk.bf16.vlgmr.msra.gmra.mxu0 %vm72_vm0, %v936_v20 }
 0xaaf   :  { %2265 = vmatpush3.bf16.msra.mxu0 %v2645_v29  ;;  %2268 = vmatprep.mubr.msk.bf16.mxu0 %vm2537_vm1, %v2536_v7 }
 0xab0   :  { %2266 = vmatprep.subr.bf16.mxu0 %v2536_v7 }
 0xab3   :  { %2267 = vmatpush3.bf16.msra.mxu0 %v2651_v30 }
 0xab4   :  { %2280 = vmatprep.subr.bf16.mxu0 %v2536_v7 }
 0xb66   :  { %v861_v21 = vpop.f32.mrf.mxu0  ;;  %v927_v22 = vpop.f32.mrf.mxu1 }
 0xb67   :  { %875 = vrot.lane.b32.xlu0 %v861_v21, %s2539_s0  ;;  %v867_v37 = vadd.f32 %v861_v21, %v2632_v11 }
 0xb68   :  { %v2238_v25 = vpop.f32.mrf.mxu0  ;;  %v2246_v23 = vpop.f32.mrf.mxu1 }
 0xb69   :  { %v2019_v39 = vmul.f32 -1.442695, %v867_v37 }
 0xb6a   :  { %v864_v26 = vpop.f32.mrf.mxu0  ;;  %v930_v27 = vpop.f32.mrf.mxu1 }
 0xb6b   :  { %2424 = vpow2.f32 %v2019_v39 }
 0xb6c   :  { %v2239_v28 = vpop.f32.mrf.mxu0  ;;  %v2247_v32 = vpop.f32.mrf.mxu1 }
 0xb6e   :  { %v974_v33 = vpop.f32.mrf.mxu0 }
 0xb6f   :  { %988 = vrot.lane.b32.xlu1 %v974_v33, %s2539_s0  ;;  %v980_v42 = vadd.f32 %v974_v33, %v927_v22 }
 0xb70   :  { %v2254_v34 = vpop.f32.mrf.mxu0 }
 0xb71   :  { %v2022_v43 = vmul.f32 -1.442695, %v980_v42 }
 0xb72   :  { %v977_v35 = vpop.f32.mrf.mxu0 }
 0xb73   :  { %2426 = vpow2.f32 %v2022_v43 }
 0xb74   :  { %v2255_v36 = vpop.f32.mrf.mxu0 }
 0xb78   :  { %v2425_v44 = vpop.eup %2424 }
 0xb79   :  { %v871_v45 = vadd.f32 1.0, %v2425_v44 }
 0xb7b   :  { %2428 = vrcp.f32 %v871_v45 }
 0xb80   :  { %v2427_v46 = vpop.eup %2426 }
 0xb81   :  { %v984_v47 = vadd.f32 1.0, %v2427_v46 }
 0xb83   :  { %2430 = vrcp.f32 %v984_v47 }
 0xb88   :  { %v2429_v48 = vpop.eup %2428 }
 0xb89   :  { %v885_v60 = vsub.f32 1.0, %v2429_v48  ;;  %v891_v62 = vmul.f32 %v2429_v48, %v2782_v6 }
 0xb90   :  { %v2431_v51 = vpop.eup %2430 }
 0xb91   :  { %v998_v1 = vsub.f32 1.0, %v2431_v51  ;;  %v1004_v3 = vmul.f32 %v2431_v51, %v2788_v18 }
 0xbd9   :  { %v876_v49 = vpop.permute.xlu0 %875 }
 0xbda   :  { %v878_v50 = vmul.f32 %v2429_v48, %v876_v49 }
 0xbdc   :  { %880 = vrot.lane.b32.xlu0 %v878_v50, %s2539_s0 }
 0xbe1   :  { %v989_v52 = vpop.permute.xlu1 %988 }
 0xbe2   :  { %v991_v53 = vmul.f32 %v2431_v51, %v989_v52 }
 0xbe4   :  { %993 = vrot.lane.b32.xlu1 %v991_v53, %s2539_s0 }
 0xc4e   :  { %v881_v54 = vpop.permute.xlu0 %880 }
 0xc4f   :  { %v883_v55 = vadd.f32 %v881_v54, %v2632_v11 }
 0xc51   :  { %2432 = vtanh.f32 %v883_v55 }
 0xc56   :  { %v994_v56 = vpop.permute.xlu1 %993 }
 0xc57   :  { %v996_v57 = vadd.f32 %v994_v56, %v927_v22 }
 0xc59   :  { %2434 = vtanh.f32 %v996_v57 }
 0xc5e   :  { %v2433_v58 = vpop.eup %2432 }
 0xc5f   :  { %887 = vrot.lane.b32.xlu0 %v2433_v58, %s2540_s21 }
 0xc66   :  { %v2435_v59 = vpop.eup %2434 }
 0xc67   :  { %1000 = vrot.lane.b32.xlu1 %v2435_v59, %s2540_s21 }
 0xcd1   :  { %v888_v61 = vpop.permute.xlu0 %887 }
 0xcd2   :  { %v890_v63 = vmul.f32 %v888_v61, %v885_v60 }
 0xcd4   :  { %v2823_v0 = vadd.f32 %v891_v62, %v890_v63 }
 0xcd6   :  { %v1006_v11 = vpack.c.bf16 %v2823_v0, %v2823_v0 }
 0xcd8   :  { %1008 = vrot.lane.b32.xlu0 %v1006_v11, %s2540_s21 }
 0xcd9   :  { %v1001_v2 = vpop.permute.xlu1 %1000 }
 0xcda   :  { %v1003_v5 = vmul.f32 %v1001_v2, %v998_v1 }
 0xcdc   :  { %v2829_v41 = vadd.f32 %v1004_v3, %v1003_v5 }
 0xcde   :  { %v1119_v9 = vpack.c.bf16 %v2829_v41, %v2829_v41 }
 0xce0   :  { %1121 = vrot.lane.b32.xlu1 %v1119_v9, %s2540_s21 }
 0xd4a   :  { %v1009_v6 = vpop.permute.xlu0 %1008 }
 0xd4b   :  { %2261 = vmatmul.mubr.msk.bf16.vlgmr.msra.gmra.mxu1 %vm72_vm0, %v1009_v6  ;;  %2269 = vmatmul.mubr.msk.bf16.vlgmr.msra.gmra.mxu0 %vm72_vm0, %v1009_v6 }
 0xd4c   :  { %2273 = vmatpush3.bf16.msra.mxu1 %v2665_v38  ;;  %2276 = vmatprep.mubr.msk.bf16.mxu1 %vm2537_vm1, %v2536_v7 }
 0xd4d   :  { %2274 = vmatprep.subr.bf16.mxu1 %v2536_v7  ;;  %2281 = vmatpush3.bf16.msra.mxu0 %v2598_v4 }
 0xd4e   :  { %2282 = vmatprep.subr.bf16.mxu0 %v2536_v7  ;;  %2284 = vmatprep.mubr.msk.bf16.mxu0 %vm2537_vm1, %v2536_v7 }
 0xd50   :  { %2275 = vmatpush3.bf16.msra.mxu1 %v2673_v40 }
 0xd51   :  { %2288 = vmatprep.subr.bf16.mxu1 %v2536_v7  ;;  %2283 = vmatpush3.bf16.msra.mxu0 %v2611_v8 }
 0xd52   :  { %v1122_v14 = vpop.permute.xlu1 %1121  ;;  %2296 = vmatprep.subr.bf16.mxu0 %v2536_v7 }
 0xd53   :  { %2277 = vmatmul.mubr.msk.bf16.vlgmr.msra.gmra.mxu1 %vm72_vm0, %v1122_v14 }
 0xd54   :  { %2289 = vmatpush3.bf16.msra.mxu1 %v2645_v29  ;;  %2292 = vmatprep.mubr.msk.bf16.mxu1 %vm2537_vm1, %v2536_v7 }
 0xd55   :  { %2290 = vmatprep.subr.bf16.mxu1 %v2536_v7 }
 0xd58   :  { %2291 = vmatpush3.bf16.msra.mxu1 %v2651_v30 }
 0xd59   :  { %2304 = vmatprep.subr.bf16.mxu1 %v2536_v7 }
 0xe0b   :  { %v1047_v15 = vpop.f32.mrf.mxu1  ;;  %v1113_v16 = vpop.f32.mrf.mxu0 }
 0xe0c   :  { %1061 = vrot.lane.b32.xlu0 %v1047_v15, %s2539_s0  ;;  %v1053_v32 = vadd.f32 %v1047_v15, %v2636_v13 }
 0xe0d   :  { %v2262_v19 = vpop.f32.mrf.mxu1  ;;  %v2270_v17 = vpop.f32.mrf.mxu0 }
 0xe0e   :  { %v2024_v33 = vmul.f32 -1.442695, %v1053_v32 }
 0xe0f   :  { %v1050_v20 = vpop.f32.mrf.mxu1  ;;  %v1116_v21 = vpop.f32.mrf.mxu0 }
 0xe10   :  { %2436 = vpow2.f32 %v2024_v33 }
 0xe11   :  { %v2263_v22 = vpop.f32.mrf.mxu1  ;;  %v2271_v25 = vpop.f32.mrf.mxu0 }
 0xe13   :  { %v1160_v23 = vpop.f32.mrf.mxu1 }
 0xe14   :  { %1174 = vrot.lane.b32.xlu1 %v1160_v23, %s2539_s0  ;;  %v1166_v34 = vadd.f32 %v1160_v23, %v1113_v16 }
 0xe15   :  { %v2278_v26 = vpop.f32.mrf.mxu1 }
 0xe16   :  { %v2027_v35 = vmul.f32 -1.442695, %v1166_v34 }
 0xe17   :  { %v1163_v27 = vpop.f32.mrf.mxu1 }
 0xe18   :  { %2438 = vpow2.f32 %v2027_v35 }
 0xe19   :  { %v2279_v28 = vpop.f32.mrf.mxu1 }
 0xe1d   :  { %v2437_v36 = vpop.eup %2436 }
 0xe1e   :  { %v1057_v37 = vadd.f32 1.0, %v2437_v36 }
 0xe20   :  { %2440 = vrcp.f32 %v1057_v37 }
 0xe25   :  { %v2439_v39 = vpop.eup %2438 }
 0xe26   :  { %v1170_v42 = vadd.f32 1.0, %v2439_v39 }
 0xe28   :  { %2442 = vrcp.f32 %v1170_v42 }
 0xe2d   :  { %v2441_v43 = vpop.eup %2440 }
 0xe2e   :  { %v1071_v55 = vsub.f32 1.0, %v2441_v43  ;;  %v1077_v57 = vmul.f32 %v2441_v43, %v2823_v0 }
 0xe35   :  { %v2443_v46 = vpop.eup %2442 }
 0xe36   :  { %v1184_v60 = vsub.f32 1.0, %v2443_v46  ;;  %v1190_v62 = vmul.f32 %v2443_v46, %v2829_v41 }
 0xe7e   :  { %v1062_v44 = vpop.permute.xlu0 %1061 }
 0xe7f   :  { %v1064_v45 = vmul.f32 %v2441_v43, %v1062_v44 }
 0xe81   :  { %1066 = vrot.lane.b32.xlu0 %v1064_v45, %s2539_s0 }
 0xe86   :  { %v1175_v47 = vpop.permute.xlu1 %1174 }
 0xe87   :  { %v1177_v48 = vmul.f32 %v2443_v46, %v1175_v47 }
 0xe89   :  { %1179 = vrot.lane.b32.xlu1 %v1177_v48, %s2539_s0 }
 0xef3   :  { %v1067_v49 = vpop.permute.xlu0 %1066 }
 0xef4   :  { %v1069_v50 = vadd.f32 %v1067_v49, %v2636_v13 }
 0xef6   :  { %2444 = vtanh.f32 %v1069_v50 }
 0xefb   :  { %v1180_v51 = vpop.permute.xlu1 %1179 }
 0xefc   :  { %v1182_v52 = vadd.f32 %v1180_v51, %v1113_v16 }
 0xefe   :  { %2446 = vtanh.f32 %v1182_v52 }
 0xf03   :  { %v2445_v53 = vpop.eup %2444 }
 0xf04   :  { %1073 = vrot.lane.b32.xlu0 %v2445_v53, %s2540_s21 }
 0xf0b   :  { %v2447_v54 = vpop.eup %2446 }
 0xf0c   :  { %1186 = vrot.lane.b32.xlu1 %v2447_v54, %s2540_s21 }
 0xf76   :  { %v1074_v56 = vpop.permute.xlu0 %1073 }
 0xf77   :  { %v1076_v58 = vmul.f32 %v1074_v56, %v1071_v55 }
 0xf79   :  { %v2864_v59 = vadd.f32 %v1077_v57, %v1076_v58 }
 0xf7b   :  { %v1192_v13 = vpack.c.bf16 %v2864_v59, %v2864_v59 }
 0xf7d   :  { %1194 = vrot.lane.b32.xlu0 %v1192_v13, %s2540_s21 }
 0xf7e   :  { %v1187_v61 = vpop.permute.xlu1 %1186 }
 0xf7f   :  { %v1189_v63 = vmul.f32 %v1187_v61, %v1184_v60 }
 0xf81   :  { %v2870_v11 = vadd.f32 %v1190_v62, %v1189_v63 }
 0xf83   :  { %v1305_v1 = vpack.c.bf16 %v2870_v11, %v2870_v11 }
 0xf85   :  { %1307 = vrot.lane.b32.xlu1 %v1305_v1, %s2540_s21 }
 0xfef   :  { %v1195_v0 = vpop.permute.xlu0 %1194 }
 0xff0   :  { %2285 = vmatmul.mubr.msk.bf16.vlgmr.msra.gmra.mxu0 %vm72_vm0, %v1195_v0  ;;  %2293 = vmatmul.mubr.msk.bf16.vlgmr.msra.gmra.mxu1 %vm72_vm0, %v1195_v0 }
 0xff1   :  { %2297 = vmatpush3.bf16.msra.mxu0 %v2665_v38  ;;  %2300 = vmatprep.mubr.msk.bf16.mxu0 %vm2537_vm1, %v2536_v7 }
 0xff2   :  { %2298 = vmatprep.subr.bf16.mxu0 %v2536_v7  ;;  %2305 = vmatpush3.bf16.msra.mxu1 %v2598_v4 }
 0xff3   :  { %2306 = vmatprep.subr.bf16.mxu1 %v2536_v7  ;;  %2308 = vmatprep.mubr.msk.bf16.mxu1 %vm2537_vm1, %v2536_v7 }
 0xff5   :  { %2299 = vmatpush3.bf16.msra.mxu0 %v2673_v40 }
 0xff6   :  { %2312 = vmatprep.subr.bf16.mxu0 %v2536_v7  ;;  %2307 = vmatpush3.bf16.msra.mxu1 %v2611_v8 }
 0xff7   :  { %v1308_v2 = vpop.permute.xlu1 %1307  ;;  %2320 = vmatprep.subr.bf16.mxu1 %v2536_v7 }
 0xff8   :  { %2301 = vmatmul.mubr.msk.bf16.vlgmr.msra.gmra.mxu0 %vm72_vm0, %v1308_v2 }
 0xff9   :  { %2313 = vmatpush3.bf16.msra.mxu0 %v2645_v29  ;;  %2316 = vmatprep.mubr.msk.bf16.mxu0 %vm2537_vm1, %v2536_v7 }
 0xffa   :  { %2314 = vmatprep.subr.bf16.mxu0 %v2536_v7 }
 0xffd   :  { %2315 = vmatpush3.bf16.msra.mxu0 %v2651_v30 }
 0xffe   :  { %2328 = vmatprep.subr.bf16.mxu0 %v2536_v7 }
0x10b0   :  { %v1233_v4 = vpop.f32.mrf.mxu0  ;;  %v1299_v3 = vpop.f32.mrf.mxu1 }
0x10b1   :  { %1247 = vrot.lane.b32.xlu0 %v1233_v4, %s2539_s0  ;;  %v1239_v21 = vadd.f32 %v2630_v10, %v1233_v4 }
0x10b2   :  { %v2286_v8 = vpop.f32.mrf.mxu0  ;;  %v2294_v5 = vpop.f32.mrf.mxu1 }
0x10b3   :  { %v2029_v22 = vmul.f32 -1.442695, %v1239_v21 }
0x10b4   :  { %v1236_v9 = vpop.f32.mrf.mxu0  ;;  %v1302_v6 = vpop.f32.mrf.mxu1 }
0x10b5   :  { %2448 = vpow2.f32 %v2029_v22 }
0x10b6   :  { %v2287_v14 = vpop.f32.mrf.mxu0  ;;  %v2295_v15 = vpop.f32.mrf.mxu1 }
0x10b8   :  { %v1346_v16 = vpop.f32.mrf.mxu0 }
0x10b9   :  { %1360 = vrot.lane.b32.xlu1 %v1346_v16, %s2539_s0  ;;  %v1352_v25 = vadd.f32 %v1346_v16, %v1299_v3 }
0x10ba   :  { %v2302_v19 = vpop.f32.mrf.mxu0 }
0x10bb   :  { %v2032_v23 = vmul.f32 -1.442695, %v1352_v25 }
0x10bc   :  { %v1349_v17 = vpop.f32.mrf.mxu0 }
0x10bd   :  { %2450 = vpow2.f32 %v2032_v23 }
0x10be   :  { %v2303_v20 = vpop.f32.mrf.mxu0 }
0x10c2   :  { %v2449_v26 = vpop.eup %2448 }
0x10c3   :  { %v1243_v27 = vadd.f32 1.0, %v2449_v26 }
0x10c5   :  { %2452 = vrcp.f32 %v1243_v27 }
0x10ca   :  { %v2451_v28 = vpop.eup %2450 }
0x10cb   :  { %v1356_v32 = vadd.f32 1.0, %v2451_v28 }
0x10cd   :  { %2454 = vrcp.f32 %v1356_v32 }
0x10d2   :  { %v2453_v33 = vpop.eup %2452 }
0x10d3   :  { %v1257_v48 = vsub.f32 1.0, %v2453_v33  ;;  %v1263_v50 = vmul.f32 %v2453_v33, %v2864_v59 }
0x10da   :  { %v2455_v36 = vpop.eup %2454 }
0x10db   :  { %v1370_v53 = vsub.f32 1.0, %v2455_v36  ;;  %v1376_v55 = vmul.f32 %v2455_v36, %v2870_v11 }
0x1123   :  { %v1248_v34 = vpop.permute.xlu0 %1247 }
0x1124   :  { %v1250_v35 = vmul.f32 %v2453_v33, %v1248_v34 }
0x1126   :  { %1252 = vrot.lane.b32.xlu0 %v1250_v35, %s2539_s0 }
0x112b   :  { %v1361_v37 = vpop.permute.xlu1 %1360 }
0x112c   :  { %v1363_v39 = vmul.f32 %v2455_v36, %v1361_v37 }
0x112e   :  { %1365 = vrot.lane.b32.xlu1 %v1363_v39, %s2539_s0 }
0x1198   :  { %v1253_v42 = vpop.permute.xlu0 %1252 }
0x1199   :  { %v1255_v43 = vadd.f32 %v2630_v10, %v1253_v42 }
0x119b   :  { %2456 = vtanh.f32 %v1255_v43 }
0x11a0   :  { %v1366_v44 = vpop.permute.xlu1 %1365 }
0x11a1   :  { %v1368_v45 = vadd.f32 %v1366_v44, %v1299_v3 }
0x11a3   :  { %2458 = vtanh.f32 %v1368_v45 }
0x11a8   :  { %v2457_v46 = vpop.eup %2456 }
0x11a9   :  { %1259 = vrot.lane.b32.xlu0 %v2457_v46, %s2540_s21 }
0x11b0   :  { %v2459_v47 = vpop.eup %2458 }
0x11b1   :  { %1372 = vrot.lane.b32.xlu1 %v2459_v47, %s2540_s21 }
0x121b   :  { %v1260_v49 = vpop.permute.xlu0 %1259 }
0x121c   :  { %v1262_v51 = vmul.f32 %v1260_v49, %v1257_v48 }
0x121e   :  { %v2905_v52 = vadd.f32 %v1263_v50, %v1262_v51 }
0x1220   :  { %v1378_v10 = vpack.c.bf16 %v2905_v52, %v2905_v52 }
0x1222   :  { %1380 = vrot.lane.b32.xlu0 %v1378_v10, %s2540_s21 }
0x1223   :  { %v1373_v54 = vpop.permute.xlu1 %1372 }
0x1224   :  { %v1375_v56 = vmul.f32 %v1373_v54, %v1370_v53 }
0x1226   :  { %v2911_v57 = vadd.f32 %v1376_v55, %v1375_v56 }
0x1228   :  { %v1491_v58 = vpack.c.bf16 %v2911_v57, %v2911_v57 }
0x122a   :  { %1493 = vrot.lane.b32.xlu1 %v1491_v58, %s2540_s21 }
0x1294   :  { %v1381_v59 = vpop.permute.xlu0 %1380 }
0x1295   :  { %2309 = vmatmul.mubr.msk.bf16.vlgmr.msra.gmra.mxu1 %vm72_vm0, %v1381_v59  ;;  %2317 = vmatmul.mubr.msk.bf16.vlgmr.msra.gmra.mxu0 %vm72_vm0, %v1381_v59 }
0x1296   :  { %2321 = vmatpush3.bf16.msra.mxu1 %v2665_v38  ;;  %2324 = vmatprep.mubr.msk.bf16.mxu1 %vm2537_vm1, %v2536_v7 }
0x1297   :  { %2322 = vmatprep.subr.bf16.mxu1 %v2536_v7  ;;  %2329 = vmatpush3.bf16.msra.mxu0 %v2645_v29 }
0x1298   :  { %2330 = vmatprep.subr.bf16.mxu0 %v2536_v7  ;;  %2332 = vmatprep.mubr.msk.bf16.mxu0 %vm2537_vm1, %v2536_v7 }
0x129a   :  { %2323 = vmatpush3.bf16.msra.mxu1 %v2673_v40 }
0x129b   :  { %2331 = vmatpush3.bf16.msra.mxu0 %v2651_v30  ;;  %2336 = vmatprep.subr.bf16.mxu1 %v2536_v7 }
0x129c   :  { %v1494_v13 = vpop.permute.xlu1 %1493 }
0x129d   :  { %2325 = vmatmul.mubr.msk.bf16.vlgmr.msra.gmra.mxu1 %vm72_vm0, %v1494_v13 }
0x129e   :  { %2337 = vmatpush3.bf16.msra.mxu1 %v2665_v38  ;;  %2340 = vmatprep.mubr.msk.bf16.mxu1 %vm2537_vm1, %v2536_v7 }
0x129f   :  { %2338 = vmatprep.subr.bf16.mxu1 %v2536_v7 }
0x12a2   :  { %2339 = vmatpush3.bf16.msra.mxu1 %v2673_v40 }
0x1355   :  { %v1419_v29 = vpop.f32.mrf.mxu1  ;;  %v1485_v60 = vpop.f32.mrf.mxu0 }
0x1356   :  { %1433 = vrot.lane.b32.xlu1 %v1419_v29, %s2539_s0  ;;  %v1425_v7 = vadd.f32 %v2634_v12, %v1419_v29 }
0x1357   :  { %v2310_v61 = vpop.f32.mrf.mxu1  ;;  %v2318_v30 = vpop.f32.mrf.mxu0 }
0x1358   :  { %v2034_v8 = vmul.f32 -1.442695, %v1425_v7  ;;  %v1684_v30 = vpack.c.bf16 %v2747_v24, %v2706_v31 }
0x1359   :  { %v1422_v62 = vpop.f32.mrf.mxu1  ;;  %v1488_v63 = vpop.f32.mrf.mxu0 }
0x135a   :  { %2460 = vpow2.f32 %v2034_v8  ;;  %v1686_v62 = vpack.c.bf16 %v2911_v57, %v2870_v11  ;;  %v2380_v63 = vld [vmem:[%s3047_s5 + $0x8] sm:$0xff]   ;;  %v1685_v11 = vpack.c.bf16 %v2829_v41, %v2788_v18  ;;  %v1800_v18 = vld [vmem:[%s3043_s1] sm:$0xff] }
0x135b   :  { %v2311_v1 = vpop.f32.mrf.mxu1  ;;  %v2319_v0 = vpop.f32.mrf.mxu0  ;;  %2344 = vmatprep.subr.bf16.mxu0 %v2380_v63  ;;  %v1808_v41 = vld [vmem:[%s3044_s2] sm:$0xff] }
0x135d   :  { %v1532_v2 = vpop.f32.mrf.mxu1 }
0x135e   :  { %1546 = vrot.lane.b32.xlu0 %v1532_v2, %s2539_s0  ;;  %v1538_v40 = vadd.f32 %v1532_v2, %v1485_v60  ;;  %v2381_v2 = vld [vmem:[%s3047_s5] sm:$0xff]  }
0x135f   :  { %v2326_v38 = vpop.f32.mrf.mxu1 }
0x1360   :  { %v2037_v5 = vmul.f32 -1.442695, %v1538_v40 }
0x1361   :  { %v1535_v4 = vpop.f32.mrf.mxu1 }
0x1362   :  { %2462 = vpow2.f32 %v2037_v5 }
0x1363   :  { %v2327_v3 = vpop.f32.mrf.mxu1 }
0x1367   :  { %v2461_v9 = vpop.eup %2460 }
0x1368   :  { %v1429_v6 = vadd.f32 1.0, %v2461_v9 }
0x136a   :  { %2464 = vrcp.f32 %v1429_v6 }
0x136f   :  { %v2463_v14 = vpop.eup %2462 }
0x1370   :  { %v1542_v15 = vadd.f32 1.0, %v2463_v14  ;;  %v1803_v14 = vld [vmem:[%s3043_s1 + $0x18] sm:$0xff] }
0x1372   :  { %2466 = vrcp.f32 %v1542_v15  ;;  %v1811_v15 = vld [vmem:[%s3044_s2 + $0x18] sm:$0xff] }
0x1377   :  { %v2465_v16 = vpop.eup %2464 }
0x1378   :  { %v1443_v33 = vsub.f32 1.0, %v2465_v16  ;;  %v1449_v35 = vmul.f32 %v2465_v16, %v2905_v52 }
0x137f   :  { %v2467_v20 = vpop.eup %2466 }
0x1380   :  { %v1562_v43 = vmul.f32 %v2467_v20, %v2911_v57 }
0x13c8   :  { %v1434_v19 = vpop.permute.xlu1 %1433 }
0x13c9   :  { %v1436_v17 = vmul.f32 %v2465_v16, %v1434_v19  ;;  %v1816_v16 = vsub.f32 %v1800_v18, %v1808_v41  ;;  %v2041_v19 = vld [vmem:[%s3048_s6] ss:$0 sm:$0xff] }
0x13cb   :  { %1438 = vrot.lane.b32.xlu1 %v1436_v17, %s2539_s0 }
0x13d0   :  { %v1547_v21 = vpop.permute.xlu0 %1546 }
0x13d1   :  { %v1549_v22 = vmul.f32 %v2467_v20, %v1547_v21  ;;  %v1809_v21 = vld [vmem:[%s3044_s2 + $0x8] sm:$0xff] }
0x13d3   :  { %1551 = vrot.lane.b32.xlu0 %v1549_v22, %s2539_s0 }
0x143d   :  { %v1439_v25 = vpop.permute.xlu1 %1438 }
0x143e   :  { %v1441_v23 = vadd.f32 %v2634_v12, %v1439_v25  ;;  %v1556_v12 = vsub.f32 1.0, %v2467_v20  ;;  %v1801_v20 = vld [vmem:[%s3043_s1 + $0x8] sm:$0xff]  ;;  %v1819_v25 = vsub.f32 %v1803_v14, %v1811_v15 }
0x1440   :  { %2468 = vtanh.f32 %v1441_v23  ;;  %v1802_v23 = vld [vmem:[%s3043_s1 + $0x10] sm:$0xff] }
0x1445   :  { %v1552_v26 = vpop.permute.xlu0 %1551 }
0x1446   :  { %v1554_v27 = vadd.f32 %v1552_v26, %v1485_v60  ;;  %v1810_v26 = vld [vmem:[%s3044_s2 + $0x10] sm:$0xff] }
0x1448   :  { %2470 = vtanh.f32 %v1554_v27 }
0x144d   :  { %v2469_v28 = vpop.eup %2468 }
0x144e   :  { %1445 = vrot.lane.b32.xlu1 %v2469_v28, %s2540_s21 }
0x1455   :  { %v2471_v32 = vpop.eup %2470 }
0x1456   :  { %1558 = vrot.lane.b32.xlu0 %v2471_v32, %s2540_s21 }
0x14c0   :  { %v1446_v34 = vpop.permute.xlu1 %1445 }
0x14c1   :  { %v1448_v36 = vmul.f32 %v1446_v34, %v1443_v33  ;;  %v1817_v33 = vsub.f32 %v1801_v20, %v1809_v21 }
0x14c3   :  { %v1450_v37 = vadd.f32 %v1449_v35, %v1448_v36  ;;  %v1818_v35 = vsub.f32 %v1802_v23, %v1810_v26 }
0x14c5   :  { %v1564_v39 = vpack.c.bf16 %v1450_v37, %v1450_v37 }
0x14c7   :  { %1566 = vrot.lane.b32.xlu1 %v1564_v39, %s2540_s21 }
0x14c8   :  { %v1559_v42 = vpop.permute.xlu0 %1558 }
0x14c9   :  { %v1561_v44 = vmul.f32 %v1559_v42, %v1556_v12 }
0x14cb   :  { %v1563_v45 = vadd.f32 %v1562_v43, %v1561_v44 }
0x14cd   :  { %v1611_v46 = vpack.c.bf16 %v1563_v45, %v1563_v45 }
0x14cf   :  { %1613 = vrot.lane.b32.xlu0 %v1611_v46, %s2540_s21 }
0x1539   :  { %v1567_v47 = vpop.permute.xlu1 %1566 }
0x153a   :  { %2333 = vmatmul.mubr.msk.bf16.vlgmr.msra.gmra.mxu0 %vm72_vm0, %v1567_v47  ;;  %v1804_v47 = vld [vmem:[%s3043_s1 + $0x20] sm:$0xff] }
0x153b   :  { %2345 = vmatpush3.bf16.msra.mxu0 %v2380_v63 }
0x153c   :  { %2346 = vmatprep.subr.bf16.mxu0 %v2381_v2 }
0x153f   :  { %2347 = vmatpush3.bf16.msra.mxu0 %v2381_v2 }
0x1541   :  { %v1614_v48 = vpop.permute.xlu0 %1613 }
0x1542   :  { %2341 = vmatmul.mubr.msk.bf16.vlgmr.msra.gmra.mxu1 %vm72_vm0, %v1614_v48  ;;  %v1812_v48 = vld [vmem:[%s3044_s2 + $0x20] sm:$0xff] }
0x15fa   :  { %v1605_v49 = vpop.f32.mrf.mxu0 }
0x15fc   :  { %v2334_v50 = vpop.f32.mrf.mxu0 }
0x15fd   :  { %v1806_v50 = vld [vmem:[%s3043_s1 + $0x30] sm:$0xff] }
0x15fe   :  { %v1608_v51 = vpop.f32.mrf.mxu0 }
0x15ff   :  { %v1814_v51 = vld [vmem:[%s3044_s2 + $0x30] sm:$0xff] }
0x1600   :  { %v2335_v52 = vpop.f32.mrf.mxu0 }
0x1601   :  { %v1820_v52 = vsub.f32 %v1804_v47, %v1812_v48 }
0x1602   :  { %v1652_v10 = vpop.f32.mrf.mxu1 }
0x1603   :  { %1666 = vrot.lane.b32.xlu0 %v1652_v10, %s2539_s0  ;;  %v1658_v56 = vadd.f32 %v1652_v10, %v1605_v49 }
0x1604   :  { %v2342_v53 = vpop.f32.mrf.mxu1 }
0x1605   :  { %v2040_v58 = vmul.f32 -1.442695, %v1658_v56  ;;  %v1805_v53 = vld [vmem:[%s3043_s1 + $0x28] sm:$0xff] }
0x1606   :  { %v1655_v54 = vpop.f32.mrf.mxu1 }
0x1607   :  { %2472 = vpow2.f32 %v2040_v58  ;;  %v1813_v54 = vld [vmem:[%s3044_s2 + $0x28] sm:$0xff]  ;;  %v1822_v58 = vsub.f32 %v1806_v50, %v1814_v51 }
0x1608   :  { %v2343_v55 = vpop.f32.mrf.mxu1 }
0x1614   :  { %v2473_v59 = vpop.eup %2472 }
0x1615   :  { %v1662_v13 = vadd.f32 1.0, %v2473_v59  ;;  %v1807_v59 = vld [vmem:[%s3043_s1 + $0x38] sm:$0xff] }
0x1617   :  { %2474 = vrcp.f32 %v1662_v13  ;;  %v1815_v13 = vld [vmem:[%s3044_s2 + $0x38] sm:$0xff] }
0x1624   :  { %v2475_v29 = vpop.eup %2474 }
0x1625   :  { %v1676_v57 = vsub.f32 1.0, %v2475_v29  ;;  %v1682_v4 = vmul.f32 %v2475_v29, %v1563_v45 }
0x1675   :  { %v1667_v60 = vpop.permute.xlu0 %1666 }
0x1676   :  { %v1669_v61 = vmul.f32 %v2475_v29, %v1667_v60 }
0x1678   :  { %1671 = vrot.lane.b32.xlu1 %v1669_v61, %s2539_s0  ;;  %v1821_v61 = vsub.f32 %v1805_v53, %v1813_v54 }
0x167c   :  { %1703 = vrot.lane.b32.xlu1 %v1684_v30, %s2540_s21 }
0x1680   :  { %1707 = vrot.lane.b32.xlu1 %v1686_v62, %s2540_s21  ;;  %v1823_v62 = vsub.f32 %v1807_v59, %v1815_v13 }
0x16ea   :  { %v1672_v1 = vpop.permute.xlu1 %1671 }
0x16eb   :  { %v1674_v0 = vadd.f32 %v1672_v1, %v1605_v49 }
0x16ed   :  { %2476 = vtanh.f32 %v1674_v0 }
0x16ee   :  { %v1704_v31 = vpop.permute.xlu1 %1703 }
0x16ef   :  { %2348 = vmatprep.mubr.msk.bf16.mxu0 %vm72_vm0, %v1704_v31 }
0x16f2   :  { %v1708_v40 = vpop.permute.xlu1 %1707 }
0x16fa   :  { %v2477_v24 = vpop.eup %2476 }
0x16fb   :  { %1678 = vrot.lane.b32.xlu0 %v2477_v24, %s2540_s21 }
0x16ff   :  { %1705 = vrot.lane.b32.xlu0 %v1685_v11, %s2540_s21 }
0x176d   :  { %v1679_v38 = vpop.permute.xlu0 %1678 }
0x176e   :  { %v1681_v3 = vmul.f32 %v1679_v38, %v1676_v57 }
0x1770   :  { %v1683_v7 = vadd.f32 %v1682_v4, %v1681_v3 }
0x1771   :  { %v1706_v8 = vpop.permute.xlu0 %1705 }
0x1772   :  { %2349 = vmatmul.mubr.msk.bf16.vlgmr.msra.gmra.mxu0 %vm72_vm0, %v1706_v8  ;;  %v1687_v5 = vpack.c.bf16 %v1683_v7, %v1563_v45 }
0x1773   :  { %2352 = vmatprep.mubr.msk.bf16.mxu0 %vm72_vm0, %v1708_v40 }
0x1774   :  { %1709 = vrot.lane.b32.xlu0 %v1687_v5, %s2540_s21 }
0x17e6   :  { %v1710_v9 = vpop.permute.xlu0 %1709 }
0x17e7   :  { %2353 = vmatmul.mubr.msk.bf16.gmra.mxu0 %vm72_vm0, %v1710_v9 }
0x1832   :  { %v2350_v6 = vpop.f32.mrf.mxu0 }
0x1833   :  { %v1778_v36 = vadd.f32 %v2350_v6, %v2041_v19 }
0x1834   :  { %v1769_v17 = vpop.f32.mrf.mxu0 }
0x1835   :  { %v1770_v22 = vadd.f32 %v2041_v19, %v1769_v17  ;;  %v1826_v45 = vmul.f32 %v1818_v35, %v1778_v36 }
0x1836   :  { %v2351_v27 = vpop.f32.mrf.mxu0 }
0x1837   :  { %v1781_v28 = vadd.f32 %v2351_v27, %v2041_v19  ;;  %v1824_v32 = vmul.f32 %v1816_v16, %v1770_v22  ;;  %v1838_v46 = vsel %vm72_vm0, %v1826_v45, 0.0 }
0x1838   :  { %v1772_v34 = vpop.f32.mrf.mxu0 }
0x1839   :  { %v1773_v37 = vadd.f32 %v2041_v19, %v1772_v34  ;;  %v1832_v39 = vsel %vm72_vm0, %v1824_v32, 0.0  ;;  %v1827_v12 = vmul.f32 %v1819_v25, %v1781_v28 }
0x183a   :  { %1833 = vadd.xlane.f32.xlu1 %v1832_v39 }
0x183b   :  { %v1825_v42 = vmul.f32 %v1817_v33, %v1773_v37  ;;  %v1841_v44 = vsel %vm72_vm0, %v1827_v12, 0.0 }
0x183d   :  { %v1835_v43 = vsel %vm72_vm0, %v1825_v42, 0.0 }
0x183e   :  { %1836 = vadd.xlane.f32.xlu0 %v1835_v43  ;;  %1842 = vadd.xlane.f32.xlu1 %v1841_v44 }
0x1842   :  { %1839 = vadd.xlane.f32.xlu0 %v1838_v46 }
0x18a7   :  { %v2354_v49 = vpop.f32.mrf.mxu0 }
0x18a8   :  { %v1794_v55 = vadd.f32 %v2354_v49, %v2041_v19 }
0x18a9   :  { %v1785_v10 = vpop.f32.mrf.mxu0 }
0x18aa   :  { %v1786_v56 = vadd.f32 %v2041_v19, %v1785_v10  ;;  %v1830_v2 = vmul.f32 %v1822_v58, %v1794_v55 }
0x18ab   :  { %v2355_v29 = vpop.f32.mrf.mxu0 }
0x18ac   :  { %v1828_v60 = vmul.f32 %v1820_v52, %v1786_v56  ;;  %v1797_v63 = vadd.f32 %v2355_v29, %v2041_v19  ;;  %v1850_v24 = vsel %vm72_vm0, %v1830_v2, 0.0 }
0x18ad   :  { %v1788_v30 = vpop.f32.mrf.mxu0 }
0x18ae   :  { %v1789_v1 = vadd.f32 %v2041_v19, %v1788_v30  ;;  %v1844_v0 = vsel %vm72_vm0, %v1828_v60, 0.0  ;;  %v1831_v57 = vmul.f32 %v1823_v62, %v1797_v63 }
0x18af   :  { %1845 = vadd.xlane.f32.xlu0 %v1844_v0 }
0x18b0   :  { %v1829_v31 = vmul.f32 %v1821_v61, %v1789_v1  ;;  %v1853_v38 = vsel %vm72_vm0, %v1831_v57, 0.0 }
0x18b2   :  { %v1847_v11 = vsel %vm72_vm0, %v1829_v31, 0.0 }
0x18b3   :  { %1851 = vadd.xlane.f32.xlu0 %v1850_v24  ;;  %1848 = vadd.xlane.f32.xlu1 %v1847_v11 }
0x18b7   :  { %1854 = vadd.xlane.f32.xlu1 %v1853_v38 }
0x18c3   :  { %v1834_v3 = vpop.xlane.xlu1 %1833 }
0x18c4   :  { %v2048_v8 = vmul.f32 -1.442695, %v1834_v3 }
0x18c6   :  { %2478 = vpow2.f32 %v2048_v8 }
0x18c7   :  { %v1837_v4 = vpop.xlane.xlu0 %1836  ;;  %v1843_v9 = vpop.xlane.xlu1 %1842 }
0x18c8   :  { %v2049_v40 = vmul.f32 -1.442695, %v1837_v4  ;;  %v2051_v18 = vmul.f32 -1.442695, %v1843_v9 }
0x18ca   :  { %2480 = vpow2.f32 %v2049_v40 }
0x18cb   :  { %v1840_v7 = vpop.xlane.xlu0 %1839 }
0x18cc   :  { %v2050_v5 = vmul.f32 -1.442695, %v1840_v7 }
0x18ce   :  { %2482 = vpow2.f32 %v2050_v5 }
0x18cf   :  { %2484 = vpow2.f32 %v2051_v18 }
0x18d3   :  { %v2479_v41 = vpop.eup %2478 }
0x18d4   :  { %v1880_v15 = vadd.f32 1.0, %v2479_v41 }
0x18d6   :  { %2486 = vrcp.f32 %v1880_v15 }
0x18d7   :  { %v2481_v6 = vpop.eup %2480 }
0x18d8   :  { %v1881_v16 = vadd.f32 1.0, %v2481_v6 }
0x18da   :  { %2488 = vrcp.f32 %v1881_v16 }
0x18db   :  { %v2483_v14 = vpop.eup %2482 }
0x18dc   :  { %v1882_v19 = vadd.f32 1.0, %v2483_v14  ;;  %v2485_v21 = vpop.eup %2484 }
0x18dd   :  { %v1883_v27 = vadd.f32 1.0, %v2485_v21 }
0x18de   :  { %2490 = vrcp.f32 %v1882_v19 }
0x18e3   :  { %v2487_v33 = vpop.eup %2486 }
0x18e4   :  { %v1904_v37 = vadd.f32 1e-10, %v2487_v33 }
0x18e7   :  { %v2489_v34 = vpop.eup %2488 }
0x18e8   :  { %v1905_v39 = vadd.f32 1e-10, %v2489_v34 }
0x18eb   :  { %v2491_v35 = vpop.eup %2490 }
0x18ec   :  { %v1906_v42 = vadd.f32 1e-10, %v2491_v35 }
0x1938   :  { %v1846_v17 = vpop.xlane.xlu0 %1845 }
0x1939   :  { %v2052_v20 = vmul.f32 -1.442695, %v1846_v17 }
0x193b   :  { %2492 = vpow2.f32 %v2052_v20 }
0x193c   :  { %v1852_v22 = vpop.xlane.xlu0 %1851  ;;  %v1849_v25 = vpop.xlane.xlu1 %1848 }
0x193d   :  { %v2054_v23 = vmul.f32 -1.442695, %v1852_v22  ;;  %v2053_v26 = vmul.f32 -1.442695, %v1849_v25 }
0x193f   :  { %2494 = vpow2.f32 %v2054_v23 }
0x1940   :  { %2496 = vpow2.f32 %v2053_v26  ;;  %v1855_v28 = vpop.xlane.xlu1 %1854 }
0x1941   :  { %v2055_v32 = vmul.f32 -1.442695, %v1855_v28  ;;  %2498 = vrcp.f32 %v1883_v27 }
0x1943   :  { %2500 = vpow2.f32 %v2055_v32 }
0x1948   :  { %v2493_v36 = vpop.eup %2492 }
0x1949   :  { %v1884_v12 = vadd.f32 1.0, %v2493_v36 }
0x194b   :  { %2502 = vrcp.f32 %v1884_v12 }
0x194c   :  { %v2495_v43 = vpop.eup %2494  ;;  %2504 = vlog2.f32 %v1904_v37 }
0x194d   :  { %v2497_v44 = vpop.eup %2496  ;;  %2506 = vlog2.f32 %v1905_v39  ;;  %v1886_v45 = vadd.f32 1.0, %v2495_v43 }
0x194e   :  { %2508 = vlog2.f32 %v1906_v42  ;;  %v1885_v46 = vadd.f32 1.0, %v2497_v44  ;;  %v2499_v47 = vpop.eup %2498 }
0x194f   :  { %2510 = vrcp.f32 %v1886_v45  ;;  %v1907_v50 = vadd.f32 1e-10, %v2499_v47 }
0x1950   :  { %v2501_v48 = vpop.eup %2500  ;;  %2512 = vrcp.f32 %v1885_v46 }
0x1951   :  { %v1887_v49 = vadd.f32 1.0, %v2501_v48 }
0x1953   :  { %2514 = vrcp.f32 %v1887_v49 }
0x1954   :  { %2516 = vlog2.f32 %v1907_v50 }
0x1958   :  { %v2503_v51 = vpop.eup %2502 }
0x1959   :  { %v2505_v52 = vpop.eup %2504  ;;  %v1908_v10 = vadd.f32 1e-10, %v2503_v51 }
0x195a   :  { %v2507_v53 = vpop.eup %2506  ;;  %v1913_v60 = vmul.f32 0.6931472, %v2505_v52 }
0x195b   :  { %v2509_v54 = vpop.eup %2508  ;;  %2518 = vlog2.f32 %v1908_v10  ;;  %v1915_v59 = vmul.f32 0.6931472, %v2507_v53 }
0x195c   :  { %v2511_v55 = vpop.eup %2510  ;;  %v1917_v61 = vmul.f32 0.6931472, %v2509_v54  ;;  %v1928_v1 = vsub.f32 0.0, %v1913_v60 }
0x195d   :  { %v2513_v56 = vpop.eup %2512  ;;  %v1910_v58 = vadd.f32 1e-10, %v2511_v55  ;;  %v1929_v62 = vsub.f32 0.0, %v1915_v59 }
0x195e   :  { %v1909_v13 = vadd.f32 1e-10, %v2513_v56  ;;  %v1930_v0 = vsub.f32 0.0, %v1917_v61  ;;  %v1937_v11 = vsel %vm1936_vm2, %v1928_v1, 0.0 }
0x195f   :  { %2520 = vlog2.f32 %v1910_v58  ;;  %v1938_v31 = vsel %vm1936_vm2, %v1929_v62, 0.0 }
0x1960   :  { %v2515_v29 = vpop.eup %2514  ;;  %2522 = vlog2.f32 %v1909_v13  ;;  %v1940_v57 = vsel %vm1936_vm2, %v1930_v0, 0.0  ;;  %v1939_v4 = vadd.f32 %v1938_v31, %v1937_v11 }
0x1961   :  { %v1911_v30 = vadd.f32 1e-10, %v2515_v29  ;;  %v2517_v63 = vpop.eup %2516 }
0x1962   :  { %v1919_v2 = vmul.f32 0.6931472, %v2517_v63  ;;  %v1941_v8 = vadd.f32 %v1940_v57, %v1939_v4 }
0x1963   :  { %2524 = vlog2.f32 %v1911_v30 }
0x1964   :  { %v1931_v3 = vsub.f32 0.0, %v1919_v2 }
0x1966   :  { %v1942_v41 = vsel %vm1936_vm2, %v1931_v3, 0.0 }
0x1967   :  { %v1943_v14 = vadd.f32 %v1942_v41, %v1941_v8 }
0x1968   :  { %v2519_v24 = vpop.eup %2518 }
0x1969   :  { %v1921_v38 = vmul.f32 0.6931472, %v2519_v24 }
0x196b   :  { %v1932_v7 = vsub.f32 0.0, %v1921_v38 }
0x196c   :  { %v2521_v40 = vpop.eup %2520 }
0x196d   :  { %v2523_v5 = vpop.eup %2522  ;;  %v1925_v9 = vmul.f32 0.6931472, %v2521_v40  ;;  %v1944_v6 = vsel %vm1936_vm2, %v1932_v7, 0.0 }
0x196e   :  { %v1923_v18 = vmul.f32 0.6931472, %v2523_v5  ;;  %v1945_v20 = vadd.f32 %v1944_v6, %v1943_v14 }
0x196f   :  { %v1934_v19 = vsub.f32 0.0, %v1925_v9 }
0x1970   :  { %v2525_v15 = vpop.eup %2524  ;;  %v1933_v16 = vsub.f32 0.0, %v1923_v18 }
0x1971   :  { %v1927_v17 = vmul.f32 0.6931472, %v2525_v15  ;;  %v1948_v23 = vsel %vm1936_vm2, %v1934_v19, 0.0 }
0x1972   :  { %v1946_v21 = vsel %vm1936_vm2, %v1933_v16, 0.0 }
0x1973   :  { %v1935_v22 = vsub.f32 0.0, %v1927_v17  ;;  %v1947_v25 = vadd.f32 %v1946_v21, %v1945_v20 }
0x1975   :  { %v1949_v26 = vadd.f32 %v1948_v23, %v1947_v25  ;;  %v1950_v27 = vsel %vm1936_vm2, %v1935_v22, 0.0 }
0x1977   :  { %v1951_v28 = vadd.f32 %v1950_v27, %v1949_v26 }
0x1979   :  { %1952 = vadd.xlane.f32.xlu0 %v1951_v28 }
0x1a02   :  { %v1953_v32 = vpop.xlane.xlu0 %1952 }
0x1a03   :  { %v1954_v33 = vrot.slane %v1953_v32, 4 }
0x1a05   :  { %v1955_v34 = vadd.f32 %v1954_v33, %v1953_v32 }
0x1a07   :  { %v1956_v35 = vrot.slane %v1955_v34, 2 }
0x1a09   :  { %v1957_v36 = vadd.f32 %v1956_v35, %v1955_v34 }
0x1a0b   :  { %v1958_v37 = vrot.slane %v1957_v36, 1 }
0x1a0d   :  { %v1959_v39 = vadd.f32 %v1958_v37, %v1957_v36 }
0x1a0f   :  { %2360 = vpush %v1959_v39 }
0x1a40   :  { %s2361_s1 = spop %2360 }
0x1a41   :  { %s1963_s2 = smul.f32 0.015625, %s2361_s1 }
0x1a43   :  { %1965 = sst [smem:[#allocation2]] %s1963_s2 }
0x1a44   :  { %1973 = dma.smem_to_hbm %s2541_s10, 16, %s3049_s7, [#allocation3]  }
0x1a45   :  { %2534 = dma.done.wait [#allocation3], 16  }
0x1a46   :  { %2535 = vsyncadd [#allocation3], 4294967280 }
0x1a47   :  { %1977 = sfence }
0x1a48   :  { %1978 = vsyncpa [#allocation3], 1 }

</bundles_post_ra>
